<compile_context>
chip_gen: v6e
topology: v6e:2x2x1
jax: 0.10.0
libtpu: 0.0.40
codegen_flags: <defaults>
</compile_context>

<pallas_src>
import jax
import jax.numpy as jnp
from jax import lax
from jax.experimental import pallas as pl
from jax.experimental.pallas import tpu as pltpu

_SUB = 8            # sublanes per chunk
_INNER = 512        # lanes per chunk  -> one chunk = (8, 512) = 4096 samples
_CHUNK_SAMPLES = _SUB * _INNER


def mine_net_kernel(p_ref, x_ref, y_ref, o_ref):
    """p_ref: SMEM (5, H) = [w1; w2; b1+b2; w3; b3-in-[4,0]].
    x_ref, y_ref, o_ref: VMEM (chunks_per_step, 8, 512) f32."""
    H = p_ref.shape[1]
    cpt = x_ref.shape[0]
    b3 = p_ref[4, 0]                       # hoisted once per grid step

    @pl.loop(0, cpt)
    def _(c):
        x = x_ref[c]                       # (8, 512) -> 4 vregs, loaded once
        y = y_ref[c]

        def h_step(h, acc):
            w1 = p_ref[0, h]
            w2 = p_ref[1, h]
            b12 = p_ref[2, h]
            w3 = p_ref[3, h]
            a = jnp.maximum(x * w1 + y * w2 + b12, 0.0)   # pure VPU
            return acc + a * w3

        acc0 = jnp.full((_SUB, x.shape[-1]), b3, dtype=jnp.float32)
        acc = lax.fori_loop(0, H, h_step, acc0, unroll=True)
        o_ref[c] = acc.astype(o_ref.dtype)                # full-vreg vst


def mine_net_forward(x, y, params, *, max_samples_per_step=65536):
    """x, y: (N, 1) float32.  params: PyTorch-layout dict:
    w1, w2: (1, H); b1, b2: (1, H); w3: (H, 1); b3: (1, 1)."""
    N = x.shape[0]
    H = params["w1"].shape[1]

    # ---- fuse all parameters into one (5, H) SMEM slab (one-time, tiny) ----
    w1 = params["w1"].reshape(H).astype(jnp.float32)
    w2 = params["w2"].reshape(H).astype(jnp.float32)
    b12 = (params["b1"] + params["b2"]).reshape(H).astype(jnp.float32)
    w3 = params["w3"].reshape(H).astype(jnp.float32)
    b3row = jnp.zeros((H,), jnp.float32).at[0].set(
        params["b3"].reshape(()).astype(jnp.float32))
    slab = jnp.stack([w1, w2, b12, w3, b3row], axis=0)        # (5, H) f32

    # ---- chunked, sublane+lane dense batch layout ----
    total_chunks = -(-N // _CHUNK_SAMPLES)
    cpt_max = max(1, max_samples_per_step // _CHUNK_SAMPLES)  # chunks / step
    cpt = min(total_chunks, cpt_max)
    num_steps = -(-total_chunks // cpt)
    chunks_pad = num_steps * cpt
    N_pad = chunks_pad * _CHUNK_SAMPLES

    x_flat = x.astype(jnp.float32).reshape(N)
    y_flat = y.astype(jnp.float32).reshape(N)
    if N_pad != N:                        # pad only when the grid needs it
        x_flat = jnp.pad(x_flat, (0, N_pad - N))
        y_flat = jnp.pad(y_flat, (0, N_pad - N))
    x3d = x_flat.reshape(chunks_pad, _SUB, _INNER)
    y3d = y_flat.reshape(chunks_pad, _SUB, _INNER)

    cost = pl.CostEstimate(flops=7 * H * N_pad,
                           transcendentals=0,
                           bytes_accessed=3 * 4 * N_pad)

    out3d = pl.pallas_call(
        mine_net_kernel,
        out_shape=jax.ShapeDtypeStruct((chunks_pad, _SUB, _INNER), jnp.float32),
        grid=(num_steps,),
        in_specs=[
            pl.BlockSpec(memory_space=pltpu.MemorySpace.SMEM),   # fused params
            pl.BlockSpec((cpt, _SUB, _INNER), lambda i: (i, 0, 0)),  # x
            pl.BlockSpec((cpt, _SUB, _INNER), lambda i: (i, 0, 0)),  # y
        ],
        out_specs=pl.BlockSpec((cpt, _SUB, _INNER), lambda i: (i, 0, 0)),
        compiler_params=pltpu.CompilerParams(
            dimension_semantics=("parallel",),
            vmem_limit_bytes=32 * 1024 * 1024),
        cost_estimate=cost,
    )(slab, x3d, y3d)

    out_flat = out3d.reshape(N_pad)
    if N_pad != N:
        out_flat = out_flat[:N]
    return out_flat.reshape(N, 1)


def init_params(key, H):
    """PyTorch-Linear-style uniform(+-1/sqrt(fan_in)) init."""
    ks = jax.random.split(key, 6)

    def u(k, shape, fan_in):
        bound = 1.0 / jnp.sqrt(jnp.float32(fan_in))
        return jax.random.uniform(k, shape, jnp.float32, -bound, bound)

    return {
        "w1": u(ks[0], (1, H), 1), "b1": u(ks[1], (1, H), 1),
        "w2": u(ks[2], (1, H), 1), "b2": u(ks[3], (1, H), 1),
        "w3": u(ks[4], (H, 1), H), "b3": u(ks[5], (1, 1), H),
    }


def reference(x, y, p):
    h1 = jnp.maximum(x @ p["w1"] + p["b1"] + y @ p["w2"] + p["b2"], 0.0)
    return h1 @ p["w3"] + p["b3"]


if __name__ == "__main__":
    H = 32   # hidden width of the MINE statistics network
    N = 8    # small batch of (x, y) sample pairs

    key = jax.random.PRNGKey(0)
    kx, ky, kp = jax.random.split(key, 3)
    x = jax.random.normal(kx, (N, 1), jnp.float32)
    y = jax.random.normal(ky, (N, 1), jnp.float32)
    params = init_params(kp, H)

    out = jax.block_until_ready(mine_net_forward(x, y, params))
    ref = reference(x, y, params)
    assert out.shape == (N, 1)
    assert jnp.allclose(out, ref, atol=1e-4, rtol=1e-4)

    # Larger, ragged batch spanning multiple grid steps (2 steps x 16 chunks).
    N2 = 70000
    kx2, ky2 = jax.random.split(jax.random.PRNGKey(1))
    x2 = jax.random.normal(kx2, (N2, 1), jnp.float32)
    y2 = jax.random.normal(ky2, (N2, 1), jnp.float32)
    out2 = jax.block_until_ready(mine_net_forward(x2, y2, params))
    ref2 = reference(x2, y2, params)
    assert out2.shape == (N2, 1)
    assert jnp.allclose(out2, ref2, atol=1e-4, rtol=1e-4)

    print("KERNEL_OK")
</pallas_src>

<mosaic_0001>
module attributes {stable_mosaic.version = 11 : i64} {
  func.func @mine_net_kernel(%arg0: i32, %arg1: memref<5x32xf32, #tpu.memory_space<smem>>, %arg2: memref<1x8x512xf32, #tpu.memory_space<vmem>>, %arg3: memref<1x8x512xf32, #tpu.memory_space<vmem>>, %arg4: memref<1x8x512xf32, #tpu.memory_space<vmem>>) attributes {dimension_semantics = [#tpu.dimension_semantics<parallel>], iteration_bounds = array<i64: 1>, scalar_prefetch = 0 : i64, scratch_operands = 0 : i64, tpu.core_type = #tpu.core_type<tc>, window_params = [{transform_indices = @transform_0, window_bounds = array<i64: 5, 32>}, {transform_indices = @transform_1, window_bounds = array<i64: 1, 8, 512>}, {transform_indices = @transform_2, window_bounds = array<i64: 1, 8, 512>}, {transform_indices = @transform_3, window_bounds = array<i64: 1, 8, 512>}]} {
    %c4 = arith.constant 4 : index
    %c0 = arith.constant 0 : index
    %0 = memref.load %arg1[%c4, %c0] : memref<5x32xf32, #tpu.memory_space<smem>>
    %c0_i32 = arith.constant 0 : i32
    %c1_i32 = arith.constant 1 : i32
    %1 = arith.muli %c0_i32, %c1_i32 : i32
    %c0_i32_0 = arith.constant 0 : i32
    %2 = arith.addi %c0_i32_0, %1 : i32
    %3 = arith.index_cast %2 : i32 to index
    %c0_1 = arith.constant 0 : index
    %c0_2 = arith.constant 0 : index
    %4 = vector.load %arg2[%3, %c0_1, %c0_2] : memref<1x8x512xf32, #tpu.memory_space<vmem>>, vector<1x8x512xf32>
    %5 = vector.shape_cast %4 : vector<1x8x512xf32> to vector<8x512xf32>
    %6 = arith.index_cast %2 : i32 to index
    %c0_3 = arith.constant 0 : index
    %c0_4 = arith.constant 0 : index
    %7 = vector.load %arg3[%6, %c0_3, %c0_4] : memref<1x8x512xf32, #tpu.memory_space<vmem>>, vector<1x8x512xf32>
    %8 = vector.shape_cast %7 : vector<1x8x512xf32> to vector<8x512xf32>
    %9 = vector.broadcast %0 : f32 to vector<8x512xf32>
    %c0_i32_5 = arith.constant 0 : i32
    %c0_6 = arith.constant 0 : index
    %10 = arith.index_cast %c0_i32_5 : i32 to index
    %11 = memref.load %arg1[%c0_6, %10] : memref<5x32xf32, #tpu.memory_space<smem>>
    %c1 = arith.constant 1 : index
    %12 = arith.index_cast %c0_i32_5 : i32 to index
    %13 = memref.load %arg1[%c1, %12] : memref<5x32xf32, #tpu.memory_space<smem>>
    %c2 = arith.constant 2 : index
    %14 = arith.index_cast %c0_i32_5 : i32 to index
    %15 = memref.load %arg1[%c2, %14] : memref<5x32xf32, #tpu.memory_space<smem>>
    %c3 = arith.constant 3 : index
    %16 = arith.index_cast %c0_i32_5 : i32 to index
    %17 = memref.load %arg1[%c3, %16] : memref<5x32xf32, #tpu.memory_space<smem>>
    %18 = vector.broadcast %11 : f32 to vector<8x512xf32>
    %19 = arith.mulf %5, %18 : vector<8x512xf32>
    %20 = vector.broadcast %13 : f32 to vector<8x512xf32>
    %21 = arith.mulf %8, %20 : vector<8x512xf32>
    %22 = arith.addf %19, %21 : vector<8x512xf32>
    %23 = vector.broadcast %15 : f32 to vector<8x512xf32>
    %24 = arith.addf %22, %23 : vector<8x512xf32>
    %cst = arith.constant 0.000000e+00 : f32
    %25 = vector.broadcast %cst : f32 to vector<8x512xf32>
    %26 = arith.maximumf %24, %25 : vector<8x512xf32>
    %27 = vector.broadcast %17 : f32 to vector<8x512xf32>
    %28 = arith.mulf %26, %27 : vector<8x512xf32>
    %29 = arith.addf %9, %28 : vector<8x512xf32>
    %c1_i32_7 = arith.constant 1 : i32
    %c0_8 = arith.constant 0 : index
    %30 = arith.index_cast %c1_i32_7 : i32 to index
    %31 = memref.load %arg1[%c0_8, %30] : memref<5x32xf32, #tpu.memory_space<smem>>
    %c1_9 = arith.constant 1 : index
    %32 = arith.index_cast %c1_i32_7 : i32 to index
    %33 = memref.load %arg1[%c1_9, %32] : memref<5x32xf32, #tpu.memory_space<smem>>
    %c2_10 = arith.constant 2 : index
    %34 = arith.index_cast %c1_i32_7 : i32 to index
    %35 = memref.load %arg1[%c2_10, %34] : memref<5x32xf32, #tpu.memory_space<smem>>
    %c3_11 = arith.constant 3 : index
    %36 = arith.index_cast %c1_i32_7 : i32 to index
    %37 = memref.load %arg1[%c3_11, %36] : memref<5x32xf32, #tpu.memory_space<smem>>
    %38 = vector.broadcast %31 : f32 to vector<8x512xf32>
    %39 = arith.mulf %5, %38 : vector<8x512xf32>
    %40 = vector.broadcast %33 : f32 to vector<8x512xf32>
    %41 = arith.mulf %8, %40 : vector<8x512xf32>
    %42 = arith.addf %39, %41 : vector<8x512xf32>
    %43 = vector.broadcast %35 : f32 to vector<8x512xf32>
    %44 = arith.addf %42, %43 : vector<8x512xf32>
    %cst_12 = arith.constant 0.000000e+00 : f32
    %45 = vector.broadcast %cst_12 : f32 to vector<8x512xf32>
    %46 = arith.maximumf %44, %45 : vector<8x512xf32>
    %47 = vector.broadcast %37 : f32 to vector<8x512xf32>
    %48 = arith.mulf %46, %47 : vector<8x512xf32>
    %49 = arith.addf %29, %48 : vector<8x512xf32>
    %c2_i32 = arith.constant 2 : i32
    %c0_13 = arith.constant 0 : index
    %50 = arith.index_cast %c2_i32 : i32 to index
    %51 = memref.load %arg1[%c0_13, %50] : memref<5x32xf32, #tpu.memory_space<smem>>
    %c1_14 = arith.constant 1 : index
    %52 = arith.index_cast %c2_i32 : i32 to index
    %53 = memref.load %arg1[%c1_14, %52] : memref<5x32xf32, #tpu.memory_space<smem>>
    %c2_15 = arith.constant 2 : index
    %54 = arith.index_cast %c2_i32 : i32 to index
    %55 = memref.load %arg1[%c2_15, %54] : memref<5x32xf32, #tpu.memory_space<smem>>
    %c3_16 = arith.constant 3 : index
    %56 = arith.index_cast %c2_i32 : i32 to index
    %57 = memref.load %arg1[%c3_16, %56] : memref<5x32xf32, #tpu.memory_space<smem>>
    %58 = vector.broadcast %51 : f32 to vector<8x512xf32>
    %59 = arith.mulf %5, %58 : vector<8x512xf32>
    %60 = vector.broadcast %53 : f32 to vector<8x512xf32>
    %61 = arith.mulf %8, %60 : vector<8x512xf32>
    %62 = arith.addf %59, %61 : vector<8x512xf32>
    %63 = vector.broadcast %55 : f32 to vector<8x512xf32>
    %64 = arith.addf %62, %63 : vector<8x512xf32>
    %cst_17 = arith.constant 0.000000e+00 : f32
    %65 = vector.broadcast %cst_17 : f32 to vector<8x512xf32>
    %66 = arith.maximumf %64, %65 : vector<8x512xf32>
    %67 = vector.broadcast %57 : f32 to vector<8x512xf32>
    %68 = arith.mulf %66, %67 : vector<8x512xf32>
    %69 = arith.addf %49, %68 : vector<8x512xf32>
    %c3_i32 = arith.constant 3 : i32
    %c0_18 = arith.constant 0 : index
    %70 = arith.index_cast %c3_i32 : i32 to index
    %71 = memref.load %arg1[%c0_18, %70] : memref<5x32xf32, #tpu.memory_space<smem>>
    %c1_19 = arith.constant 1 : index
    %72 = arith.index_cast %c3_i32 : i32 to index
    %73 = memref.load %arg1[%c1_19, %72] : memref<5x32xf32, #tpu.memory_space<smem>>
    %c2_20 = arith.constant 2 : index
    %74 = arith.index_cast %c3_i32 : i32 to index
    %75 = memref.load %arg1[%c2_20, %74] : memref<5x32xf32, #tpu.memory_space<smem>>
    %c3_21 = arith.constant 3 : index
    %76 = arith.index_cast %c3_i32 : i32 to index
    %77 = memref.load %arg1[%c3_21, %76] : memref<5x32xf32, #tpu.memory_space<smem>>
    %78 = vector.broadcast %71 : f32 to vector<8x512xf32>
    %79 = arith.mulf %5, %78 : vector<8x512xf32>
    %80 = vector.broadcast %73 : f32 to vector<8x512xf32>
    %81 = arith.mulf %8, %80 : vector<8x512xf32>
    %82 = arith.addf %79, %81 : vector<8x512xf32>
    %83 = vector.broadcast %75 : f32 to vector<8x512xf32>
    %84 = arith.addf %82, %83 : vector<8x512xf32>
    %cst_22 = arith.constant 0.000000e+00 : f32
    %85 = vector.broadcast %cst_22 : f32 to vector<8x512xf32>
    %86 = arith.maximumf %84, %85 : vector<8x512xf32>
    %87 = vector.broadcast %77 : f32 to vector<8x512xf32>
    %88 = arith.mulf %86, %87 : vector<8x512xf32>
    %89 = arith.addf %69, %88 : vector<8x512xf32>
    %c4_i32 = arith.constant 4 : i32
    %c0_23 = arith.constant 0 : index
    %90 = arith.index_cast %c4_i32 : i32 to index
    %91 = memref.load %arg1[%c0_23, %90] : memref<5x32xf32, #tpu.memory_space<smem>>
    %c1_24 = arith.constant 1 : index
    %92 = arith.index_cast %c4_i32 : i32 to index
    %93 = memref.load %arg1[%c1_24, %92] : memref<5x32xf32, #tpu.memory_space<smem>>
    %c2_25 = arith.constant 2 : index
    %94 = arith.index_cast %c4_i32 : i32 to index
    %95 = memref.load %arg1[%c2_25, %94] : memref<5x32xf32, #tpu.memory_space<smem>>
    %c3_26 = arith.constant 3 : index
    %96 = arith.index_cast %c4_i32 : i32 to index
    %97 = memref.load %arg1[%c3_26, %96] : memref<5x32xf32, #tpu.memory_space<smem>>
    %98 = vector.broadcast %91 : f32 to vector<8x512xf32>
    %99 = arith.mulf %5, %98 : vector<8x512xf32>
    %100 = vector.broadcast %93 : f32 to vector<8x512xf32>
    %101 = arith.mulf %8, %100 : vector<8x512xf32>
    %102 = arith.addf %99, %101 : vector<8x512xf32>
    %103 = vector.broadcast %95 : f32 to vector<8x512xf32>
    %104 = arith.addf %102, %103 : vector<8x512xf32>
    %cst_27 = arith.constant 0.000000e+00 : f32
    %105 = vector.broadcast %cst_27 : f32 to vector<8x512xf32>
    %106 = arith.maximumf %104, %105 : vector<8x512xf32>
    %107 = vector.broadcast %97 : f32 to vector<8x512xf32>
    %108 = arith.mulf %106, %107 : vector<8x512xf32>
    %109 = arith.addf %89, %108 : vector<8x512xf32>
    %c5_i32 = arith.constant 5 : i32
    %c0_28 = arith.constant 0 : index
    %110 = arith.index_cast %c5_i32 : i32 to index
    %111 = memref.load %arg1[%c0_28, %110] : memref<5x32xf32, #tpu.memory_space<smem>>
    %c1_29 = arith.constant 1 : index
    %112 = arith.index_cast %c5_i32 : i32 to index
    %113 = memref.load %arg1[%c1_29, %112] : memref<5x32xf32, #tpu.memory_space<smem>>
    %c2_30 = arith.constant 2 : index
    %114 = arith.index_cast %c5_i32 : i32 to index
    %115 = memref.load %arg1[%c2_30, %114] : memref<5x32xf32, #tpu.memory_space<smem>>
    %c3_31 = arith.constant 3 : index
    %116 = arith.index_cast %c5_i32 : i32 to index
    %117 = memref.load %arg1[%c3_31, %116] : memref<5x32xf32, #tpu.memory_space<smem>>
    %118 = vector.broadcast %111 : f32 to vector<8x512xf32>
    %119 = arith.mulf %5, %118 : vector<8x512xf32>
    %120 = vector.broadcast %113 : f32 to vector<8x512xf32>
    %121 = arith.mulf %8, %120 : vector<8x512xf32>
    %122 = arith.addf %119, %121 : vector<8x512xf32>
    %123 = vector.broadcast %115 : f32 to vector<8x512xf32>
    %124 = arith.addf %122, %123 : vector<8x512xf32>
    %cst_32 = arith.constant 0.000000e+00 : f32
    %125 = vector.broadcast %cst_32 : f32 to vector<8x512xf32>
    %126 = arith.maximumf %124, %125 : vector<8x512xf32>
    %127 = vector.broadcast %117 : f32 to vector<8x512xf32>
    %128 = arith.mulf %126, %127 : vector<8x512xf32>
    %129 = arith.addf %109, %128 : vector<8x512xf32>
    %c6_i32 = arith.constant 6 : i32
    %c0_33 = arith.constant 0 : index
    %130 = arith.index_cast %c6_i32 : i32 to index
    %131 = memref.load %arg1[%c0_33, %130] : memref<5x32xf32, #tpu.memory_space<smem>>
    %c1_34 = arith.constant 1 : index
    %132 = arith.index_cast %c6_i32 : i32 to index
    %133 = memref.load %arg1[%c1_34, %132] : memref<5x32xf32, #tpu.memory_space<smem>>
    %c2_35 = arith.constant 2 : index
    %134 = arith.index_cast %c6_i32 : i32 to index
    %135 = memref.load %arg1[%c2_35, %134] : memref<5x32xf32, #tpu.memory_space<smem>>
    %c3_36 = arith.constant 3 : index
    %136 = arith.index_cast %c6_i32 : i32 to index
    %137 = memref.load %arg1[%c3_36, %136] : memref<5x32xf32, #tpu.memory_space<smem>>
    %138 = vector.broadcast %131 : f32 to vector<8x512xf32>
    %139 = arith.mulf %5, %138 : vector<8x512xf32>
    %140 = vector.broadcast %133 : f32 to vector<8x512xf32>
    %141 = arith.mulf %8, %140 : vector<8x512xf32>
    %142 = arith.addf %139, %141 : vector<8x512xf32>
    %143 = vector.broadcast %135 : f32 to vector<8x512xf32>
    %144 = arith.addf %142, %143 : vector<8x512xf32>
    %cst_37 = arith.constant 0.000000e+00 : f32
    %145 = vector.broadcast %cst_37 : f32 to vector<8x512xf32>
    %146 = arith.maximumf %144, %145 : vector<8x512xf32>
    %147 = vector.broadcast %137 : f32 to vector<8x512xf32>
    %148 = arith.mulf %146, %147 : vector<8x512xf32>
    %149 = arith.addf %129, %148 : vector<8x512xf32>
    %c7_i32 = arith.constant 7 : i32
    %c0_38 = arith.constant 0 : index
    %150 = arith.index_cast %c7_i32 : i32 to index
    %151 = memref.load %arg1[%c0_38, %150] : memref<5x32xf32, #tpu.memory_space<smem>>
    %c1_39 = arith.constant 1 : index
    %152 = arith.index_cast %c7_i32 : i32 to index
    %153 = memref.load %arg1[%c1_39, %152] : memref<5x32xf32, #tpu.memory_space<smem>>
    %c2_40 = arith.constant 2 : index
    %154 = arith.index_cast %c7_i32 : i32 to index
    %155 = memref.load %arg1[%c2_40, %154] : memref<5x32xf32, #tpu.memory_space<smem>>
    %c3_41 = arith.constant 3 : index
    %156 = arith.index_cast %c7_i32 : i32 to index
    %157 = memref.load %arg1[%c3_41, %156] : memref<5x32xf32, #tpu.memory_space<smem>>
    %158 = vector.broadcast %151 : f32 to vector<8x512xf32>
    %159 = arith.mulf %5, %158 : vector<8x512xf32>
    %160 = vector.broadcast %153 : f32 to vector<8x512xf32>
    %161 = arith.mulf %8, %160 : vector<8x512xf32>
    %162 = arith.addf %159, %161 : vector<8x512xf32>
    %163 = vector.broadcast %155 : f32 to vector<8x512xf32>
    %164 = arith.addf %162, %163 : vector<8x512xf32>
    %cst_42 = arith.constant 0.000000e+00 : f32
    %165 = vector.broadcast %cst_42 : f32 to vector<8x512xf32>
    %166 = arith.maximumf %164, %165 : vector<8x512xf32>
    %167 = vector.broadcast %157 : f32 to vector<8x512xf32>
    %168 = arith.mulf %166, %167 : vector<8x512xf32>
    %169 = arith.addf %149, %168 : vector<8x512xf32>
    %c8_i32 = arith.constant 8 : i32
    %c0_43 = arith.constant 0 : index
    %170 = arith.index_cast %c8_i32 : i32 to index
    %171 = memref.load %arg1[%c0_43, %170] : memref<5x32xf32, #tpu.memory_space<smem>>
    %c1_44 = arith.constant 1 : index
    %172 = arith.index_cast %c8_i32 : i32 to index
    %173 = memref.load %arg1[%c1_44, %172] : memref<5x32xf32, #tpu.memory_space<smem>>
    %c2_45 = arith.constant 2 : index
    %174 = arith.index_cast %c8_i32 : i32 to index
    %175 = memref.load %arg1[%c2_45, %174] : memref<5x32xf32, #tpu.memory_space<smem>>
    %c3_46 = arith.constant 3 : index
    %176 = arith.index_cast %c8_i32 : i32 to index
    %177 = memref.load %arg1[%c3_46, %176] : memref<5x32xf32, #tpu.memory_space<smem>>
    %178 = vector.broadcast %171 : f32 to vector<8x512xf32>
    %179 = arith.mulf %5, %178 : vector<8x512xf32>
    %180 = vector.broadcast %173 : f32 to vector<8x512xf32>
    %181 = arith.mulf %8, %180 : vector<8x512xf32>
    %182 = arith.addf %179, %181 : vector<8x512xf32>
    %183 = vector.broadcast %175 : f32 to vector<8x512xf32>
    %184 = arith.addf %182, %183 : vector<8x512xf32>
    %cst_47 = arith.constant 0.000000e+00 : f32
    %185 = vector.broadcast %cst_47 : f32 to vector<8x512xf32>
    %186 = arith.maximumf %184, %185 : vector<8x512xf32>
    %187 = vector.broadcast %177 : f32 to vector<8x512xf32>
    %188 = arith.mulf %186, %187 : vector<8x512xf32>
    %189 = arith.addf %169, %188 : vector<8x512xf32>
    %c9_i32 = arith.constant 9 : i32
    %c0_48 = arith.constant 0 : index
    %190 = arith.index_cast %c9_i32 : i32 to index
    %191 = memref.load %arg1[%c0_48, %190] : memref<5x32xf32, #tpu.memory_space<smem>>
    %c1_49 = arith.constant 1 : index
    %192 = arith.index_cast %c9_i32 : i32 to index
    %193 = memref.load %arg1[%c1_49, %192] : memref<5x32xf32, #tpu.memory_space<smem>>
    %c2_50 = arith.constant 2 : index
    %194 = arith.index_cast %c9_i32 : i32 to index
    %195 = memref.load %arg1[%c2_50, %194] : memref<5x32xf32, #tpu.memory_space<smem>>
    %c3_51 = arith.constant 3 : index
    %196 = arith.index_cast %c9_i32 : i32 to index
    %197 = memref.load %arg1[%c3_51, %196] : memref<5x32xf32, #tpu.memory_space<smem>>
    %198 = vector.broadcast %191 : f32 to vector<8x512xf32>
    %199 = arith.mulf %5, %198 : vector<8x512xf32>
    %200 = vector.broadcast %193 : f32 to vector<8x512xf32>
    %201 = arith.mulf %8, %200 : vector<8x512xf32>
    %202 = arith.addf %199, %201 : vector<8x512xf32>
    %203 = vector.broadcast %195 : f32 to vector<8x512xf32>
    %204 = arith.addf %202, %203 : vector<8x512xf32>
    %cst_52 = arith.constant 0.000000e+00 : f32
    %205 = vector.broadcast %cst_52 : f32 to vector<8x512xf32>
    %206 = arith.maximumf %204, %205 : vector<8x512xf32>
    %207 = vector.broadcast %197 : f32 to vector<8x512xf32>
    %208 = arith.mulf %206, %207 : vector<8x512xf32>
    %209 = arith.addf %189, %208 : vector<8x512xf32>
    %c10_i32 = arith.constant 10 : i32
    %c0_53 = arith.constant 0 : index
    %210 = arith.index_cast %c10_i32 : i32 to index
    %211 = memref.load %arg1[%c0_53, %210] : memref<5x32xf32, #tpu.memory_space<smem>>
    %c1_54 = arith.constant 1 : index
    %212 = arith.index_cast %c10_i32 : i32 to index
    %213 = memref.load %arg1[%c1_54, %212] : memref<5x32xf32, #tpu.memory_space<smem>>
    %c2_55 = arith.constant 2 : index
    %214 = arith.index_cast %c10_i32 : i32 to index
    %215 = memref.load %arg1[%c2_55, %214] : memref<5x32xf32, #tpu.memory_space<smem>>
    %c3_56 = arith.constant 3 : index
    %216 = arith.index_cast %c10_i32 : i32 to index
    %217 = memref.load %arg1[%c3_56, %216] : memref<5x32xf32, #tpu.memory_space<smem>>
    %218 = vector.broadcast %211 : f32 to vector<8x512xf32>
    %219 = arith.mulf %5, %218 : vector<8x512xf32>
    %220 = vector.broadcast %213 : f32 to vector<8x512xf32>
    %221 = arith.mulf %8, %220 : vector<8x512xf32>
    %222 = arith.addf %219, %221 : vector<8x512xf32>
    %223 = vector.broadcast %215 : f32 to vector<8x512xf32>
    %224 = arith.addf %222, %223 : vector<8x512xf32>
    %cst_57 = arith.constant 0.000000e+00 : f32
    %225 = vector.broadcast %cst_57 : f32 to vector<8x512xf32>
    %226 = arith.maximumf %224, %225 : vector<8x512xf32>
    %227 = vector.broadcast %217 : f32 to vector<8x512xf32>
    %228 = arith.mulf %226, %227 : vector<8x512xf32>
    %229 = arith.addf %209, %228 : vector<8x512xf32>
    %c11_i32 = arith.constant 11 : i32
    %c0_58 = arith.constant 0 : index
    %230 = arith.index_cast %c11_i32 : i32 to index
    %231 = memref.load %arg1[%c0_58, %230] : memref<5x32xf32, #tpu.memory_space<smem>>
    %c1_59 = arith.constant 1 : index
    %232 = arith.index_cast %c11_i32 : i32 to index
    %233 = memref.load %arg1[%c1_59, %232] : memref<5x32xf32, #tpu.memory_space<smem>>
    %c2_60 = arith.constant 2 : index
    %234 = arith.index_cast %c11_i32 : i32 to index
    %235 = memref.load %arg1[%c2_60, %234] : memref<5x32xf32, #tpu.memory_space<smem>>
    %c3_61 = arith.constant 3 : index
    %236 = arith.index_cast %c11_i32 : i32 to index
    %237 = memref.load %arg1[%c3_61, %236] : memref<5x32xf32, #tpu.memory_space<smem>>
    %238 = vector.broadcast %231 : f32 to vector<8x512xf32>
    %239 = arith.mulf %5, %238 : vector<8x512xf32>
    %240 = vector.broadcast %233 : f32 to vector<8x512xf32>
    %241 = arith.mulf %8, %240 : vector<8x512xf32>
    %242 = arith.addf %239, %241 : vector<8x512xf32>
    %243 = vector.broadcast %235 : f32 to vector<8x512xf32>
    %244 = arith.addf %242, %243 : vector<8x512xf32>
    %cst_62 = arith.constant 0.000000e+00 : f32
    %245 = vector.broadcast %cst_62 : f32 to vector<8x512xf32>
    %246 = arith.maximumf %244, %245 : vector<8x512xf32>
    %247 = vector.broadcast %237 : f32 to vector<8x512xf32>
    %248 = arith.mulf %246, %247 : vector<8x512xf32>
    %249 = arith.addf %229, %248 : vector<8x512xf32>
    %c12_i32 = arith.constant 12 : i32
    %c0_63 = arith.constant 0 : index
    %250 = arith.index_cast %c12_i32 : i32 to index
    %251 = memref.load %arg1[%c0_63, %250] : memref<5x32xf32, #tpu.memory_space<smem>>
    %c1_64 = arith.constant 1 : index
    %252 = arith.index_cast %c12_i32 : i32 to index
    %253 = memref.load %arg1[%c1_64, %252] : memref<5x32xf32, #tpu.memory_space<smem>>
    %c2_65 = arith.constant 2 : index
    %254 = arith.index_cast %c12_i32 : i32 to index
    %255 = memref.load %arg1[%c2_65, %254] : memref<5x32xf32, #tpu.memory_space<smem>>
    %c3_66 = arith.constant 3 : index
    %256 = arith.index_cast %c12_i32 : i32 to index
    %257 = memref.load %arg1[%c3_66, %256] : memref<5x32xf32, #tpu.memory_space<smem>>
    %258 = vector.broadcast %251 : f32 to vector<8x512xf32>
    %259 = arith.mulf %5, %258 : vector<8x512xf32>
    %260 = vector.broadcast %253 : f32 to vector<8x512xf32>
    %261 = arith.mulf %8, %260 : vector<8x512xf32>
    %262 = arith.addf %259, %261 : vector<8x512xf32>
    %263 = vector.broadcast %255 : f32 to vector<8x512xf32>
    %264 = arith.addf %262, %263 : vector<8x512xf32>
    %cst_67 = arith.constant 0.000000e+00 : f32
    %265 = vector.broadcast %cst_67 : f32 to vector<8x512xf32>
    %266 = arith.maximumf %264, %265 : vector<8x512xf32>
    %267 = vector.broadcast %257 : f32 to vector<8x512xf32>
    %268 = arith.mulf %266, %267 : vector<8x512xf32>
    %269 = arith.addf %249, %268 : vector<8x512xf32>
    %c13_i32 = arith.constant 13 : i32
    %c0_68 = arith.constant 0 : index
    %270 = arith.index_cast %c13_i32 : i32 to index
    %271 = memref.load %arg1[%c0_68, %270] : memref<5x32xf32, #tpu.memory_space<smem>>
    %c1_69 = arith.constant 1 : index
    %272 = arith.index_cast %c13_i32 : i32 to index
    %273 = memref.load %arg1[%c1_69, %272] : memref<5x32xf32, #tpu.memory_space<smem>>
    %c2_70 = arith.constant 2 : index
    %274 = arith.index_cast %c13_i32 : i32 to index
    %275 = memref.load %arg1[%c2_70, %274] : memref<5x32xf32, #tpu.memory_space<smem>>
    %c3_71 = arith.constant 3 : index
    %276 = arith.index_cast %c13_i32 : i32 to index
    %277 = memref.load %arg1[%c3_71, %276] : memref<5x32xf32, #tpu.memory_space<smem>>
    %278 = vector.broadcast %271 : f32 to vector<8x512xf32>
    %279 = arith.mulf %5, %278 : vector<8x512xf32>
    %280 = vector.broadcast %273 : f32 to vector<8x512xf32>
    %281 = arith.mulf %8, %280 : vector<8x512xf32>
    %282 = arith.addf %279, %281 : vector<8x512xf32>
    %283 = vector.broadcast %275 : f32 to vector<8x512xf32>
    %284 = arith.addf %282, %283 : vector<8x512xf32>
    %cst_72 = arith.constant 0.000000e+00 : f32
    %285 = vector.broadcast %cst_72 : f32 to vector<8x512xf32>
    %286 = arith.maximumf %284, %285 : vector<8x512xf32>
    %287 = vector.broadcast %277 : f32 to vector<8x512xf32>
    %288 = arith.mulf %286, %287 : vector<8x512xf32>
    %289 = arith.addf %269, %288 : vector<8x512xf32>
    %c14_i32 = arith.constant 14 : i32
    %c0_73 = arith.constant 0 : index
    %290 = arith.index_cast %c14_i32 : i32 to index
    %291 = memref.load %arg1[%c0_73, %290] : memref<5x32xf32, #tpu.memory_space<smem>>
    %c1_74 = arith.constant 1 : index
    %292 = arith.index_cast %c14_i32 : i32 to index
    %293 = memref.load %arg1[%c1_74, %292] : memref<5x32xf32, #tpu.memory_space<smem>>
    %c2_75 = arith.constant 2 : index
    %294 = arith.index_cast %c14_i32 : i32 to index
    %295 = memref.load %arg1[%c2_75, %294] : memref<5x32xf32, #tpu.memory_space<smem>>
    %c3_76 = arith.constant 3 : index
    %296 = arith.index_cast %c14_i32 : i32 to index
    %297 = memref.load %arg1[%c3_76, %296] : memref<5x32xf32, #tpu.memory_space<smem>>
    %298 = vector.broadcast %291 : f32 to vector<8x512xf32>
    %299 = arith.mulf %5, %298 : vector<8x512xf32>
    %300 = vector.broadcast %293 : f32 to vector<8x512xf32>
    %301 = arith.mulf %8, %300 : vector<8x512xf32>
    %302 = arith.addf %299, %301 : vector<8x512xf32>
    %303 = vector.broadcast %295 : f32 to vector<8x512xf32>
    %304 = arith.addf %302, %303 : vector<8x512xf32>
    %cst_77 = arith.constant 0.000000e+00 : f32
    %305 = vector.broadcast %cst_77 : f32 to vector<8x512xf32>
    %306 = arith.maximumf %304, %305 : vector<8x512xf32>
    %307 = vector.broadcast %297 : f32 to vector<8x512xf32>
    %308 = arith.mulf %306, %307 : vector<8x512xf32>
    %309 = arith.addf %289, %308 : vector<8x512xf32>
    %c15_i32 = arith.constant 15 : i32
    %c0_78 = arith.constant 0 : index
    %310 = arith.index_cast %c15_i32 : i32 to index
    %311 = memref.load %arg1[%c0_78, %310] : memref<5x32xf32, #tpu.memory_space<smem>>
    %c1_79 = arith.constant 1 : index
    %312 = arith.index_cast %c15_i32 : i32 to index
    %313 = memref.load %arg1[%c1_79, %312] : memref<5x32xf32, #tpu.memory_space<smem>>
    %c2_80 = arith.constant 2 : index
    %314 = arith.index_cast %c15_i32 : i32 to index
    %315 = memref.load %arg1[%c2_80, %314] : memref<5x32xf32, #tpu.memory_space<smem>>
    %c3_81 = arith.constant 3 : index
    %316 = arith.index_cast %c15_i32 : i32 to index
    %317 = memref.load %arg1[%c3_81, %316] : memref<5x32xf32, #tpu.memory_space<smem>>
    %318 = vector.broadcast %311 : f32 to vector<8x512xf32>
    %319 = arith.mulf %5, %318 : vector<8x512xf32>
    %320 = vector.broadcast %313 : f32 to vector<8x512xf32>
    %321 = arith.mulf %8, %320 : vector<8x512xf32>
    %322 = arith.addf %319, %321 : vector<8x512xf32>
    %323 = vector.broadcast %315 : f32 to vector<8x512xf32>
    %324 = arith.addf %322, %323 : vector<8x512xf32>
    %cst_82 = arith.constant 0.000000e+00 : f32
    %325 = vector.broadcast %cst_82 : f32 to vector<8x512xf32>
    %326 = arith.maximumf %324, %325 : vector<8x512xf32>
    %327 = vector.broadcast %317 : f32 to vector<8x512xf32>
    %328 = arith.mulf %326, %327 : vector<8x512xf32>
    %329 = arith.addf %309, %328 : vector<8x512xf32>
    %c16_i32 = arith.constant 16 : i32
    %c0_83 = arith.constant 0 : index
    %330 = arith.index_cast %c16_i32 : i32 to index
    %331 = memref.load %arg1[%c0_83, %330] : memref<5x32xf32, #tpu.memory_space<smem>>
    %c1_84 = arith.constant 1 : index
    %332 = arith.index_cast %c16_i32 : i32 to index
    %333 = memref.load %arg1[%c1_84, %332] : memref<5x32xf32, #tpu.memory_space<smem>>
    %c2_85 = arith.constant 2 : index
    %334 = arith.index_cast %c16_i32 : i32 to index
    %335 = memref.load %arg1[%c2_85, %334] : memref<5x32xf32, #tpu.memory_space<smem>>
    %c3_86 = arith.constant 3 : index
    %336 = arith.index_cast %c16_i32 : i32 to index
    %337 = memref.load %arg1[%c3_86, %336] : memref<5x32xf32, #tpu.memory_space<smem>>
    %338 = vector.broadcast %331 : f32 to vector<8x512xf32>
    %339 = arith.mulf %5, %338 : vector<8x512xf32>
    %340 = vector.broadcast %333 : f32 to vector<8x512xf32>
    %341 = arith.mulf %8, %340 : vector<8x512xf32>
    %342 = arith.addf %339, %341 : vector<8x512xf32>
    %343 = vector.broadcast %335 : f32 to vector<8x512xf32>
    %344 = arith.addf %342, %343 : vector<8x512xf32>
    %cst_87 = arith.constant 0.000000e+00 : f32
    %345 = vector.broadcast %cst_87 : f32 to vector<8x512xf32>
    %346 = arith.maximumf %344, %345 : vector<8x512xf32>
    %347 = vector.broadcast %337 : f32 to vector<8x512xf32>
    %348 = arith.mulf %346, %347 : vector<8x512xf32>
    %349 = arith.addf %329, %348 : vector<8x512xf32>
    %c17_i32 = arith.constant 17 : i32
    %c0_88 = arith.constant 0 : index
    %350 = arith.index_cast %c17_i32 : i32 to index
    %351 = memref.load %arg1[%c0_88, %350] : memref<5x32xf32, #tpu.memory_space<smem>>
    %c1_89 = arith.constant 1 : index
    %352 = arith.index_cast %c17_i32 : i32 to index
    %353 = memref.load %arg1[%c1_89, %352] : memref<5x32xf32, #tpu.memory_space<smem>>
    %c2_90 = arith.constant 2 : index
    %354 = arith.index_cast %c17_i32 : i32 to index
    %355 = memref.load %arg1[%c2_90, %354] : memref<5x32xf32, #tpu.memory_space<smem>>
    %c3_91 = arith.constant 3 : index
    %356 = arith.index_cast %c17_i32 : i32 to index
    %357 = memref.load %arg1[%c3_91, %356] : memref<5x32xf32, #tpu.memory_space<smem>>
    %358 = vector.broadcast %351 : f32 to vector<8x512xf32>
    %359 = arith.mulf %5, %358 : vector<8x512xf32>
    %360 = vector.broadcast %353 : f32 to vector<8x512xf32>
    %361 = arith.mulf %8, %360 : vector<8x512xf32>
    %362 = arith.addf %359, %361 : vector<8x512xf32>
    %363 = vector.broadcast %355 : f32 to vector<8x512xf32>
    %364 = arith.addf %362, %363 : vector<8x512xf32>
    %cst_92 = arith.constant 0.000000e+00 : f32
    %365 = vector.broadcast %cst_92 : f32 to vector<8x512xf32>
    %366 = arith.maximumf %364, %365 : vector<8x512xf32>
    %367 = vector.broadcast %357 : f32 to vector<8x512xf32>
    %368 = arith.mulf %366, %367 : vector<8x512xf32>
    %369 = arith.addf %349, %368 : vector<8x512xf32>
    %c18_i32 = arith.constant 18 : i32
    %c0_93 = arith.constant 0 : index
    %370 = arith.index_cast %c18_i32 : i32 to index
    %371 = memref.load %arg1[%c0_93, %370] : memref<5x32xf32, #tpu.memory_space<smem>>
    %c1_94 = arith.constant 1 : index
    %372 = arith.index_cast %c18_i32 : i32 to index
    %373 = memref.load %arg1[%c1_94, %372] : memref<5x32xf32, #tpu.memory_space<smem>>
    %c2_95 = arith.constant 2 : index
    %374 = arith.index_cast %c18_i32 : i32 to index
    %375 = memref.load %arg1[%c2_95, %374] : memref<5x32xf32, #tpu.memory_space<smem>>
    %c3_96 = arith.constant 3 : index
    %376 = arith.index_cast %c18_i32 : i32 to index
    %377 = memref.load %arg1[%c3_96, %376] : memref<5x32xf32, #tpu.memory_space<smem>>
    %378 = vector.broadcast %371 : f32 to vector<8x512xf32>
    %379 = arith.mulf %5, %378 : vector<8x512xf32>
    %380 = vector.broadcast %373 : f32 to vector<8x512xf32>
    %381 = arith.mulf %8, %380 : vector<8x512xf32>
    %382 = arith.addf %379, %381 : vector<8x512xf32>
    %383 = vector.broadcast %375 : f32 to vector<8x512xf32>
    %384 = arith.addf %382, %383 : vector<8x512xf32>
    %cst_97 = arith.constant 0.000000e+00 : f32
    %385 = vector.broadcast %cst_97 : f32 to vector<8x512xf32>
    %386 = arith.maximumf %384, %385 : vector<8x512xf32>
    %387 = vector.broadcast %377 : f32 to vector<8x512xf32>
    %388 = arith.mulf %386, %387 : vector<8x512xf32>
    %389 = arith.addf %369, %388 : vector<8x512xf32>
    %c19_i32 = arith.constant 19 : i32
    %c0_98 = arith.constant 0 : index
    %390 = arith.index_cast %c19_i32 : i32 to index
    %391 = memref.load %arg1[%c0_98, %390] : memref<5x32xf32, #tpu.memory_space<smem>>
    %c1_99 = arith.constant 1 : index
    %392 = arith.index_cast %c19_i32 : i32 to index
    %393 = memref.load %arg1[%c1_99, %392] : memref<5x32xf32, #tpu.memory_space<smem>>
    %c2_100 = arith.constant 2 : index
    %394 = arith.index_cast %c19_i32 : i32 to index
    %395 = memref.load %arg1[%c2_100, %394] : memref<5x32xf32, #tpu.memory_space<smem>>
    %c3_101 = arith.constant 3 : index
    %396 = arith.index_cast %c19_i32 : i32 to index
    %397 = memref.load %arg1[%c3_101, %396] : memref<5x32xf32, #tpu.memory_space<smem>>
    %398 = vector.broadcast %391 : f32 to vector<8x512xf32>
    %399 = arith.mulf %5, %398 : vector<8x512xf32>
    %400 = vector.broadcast %393 : f32 to vector<8x512xf32>
    %401 = arith.mulf %8, %400 : vector<8x512xf32>
    %402 = arith.addf %399, %401 : vector<8x512xf32>
    %403 = vector.broadcast %395 : f32 to vector<8x512xf32>
    %404 = arith.addf %402, %403 : vector<8x512xf32>
    %cst_102 = arith.constant 0.000000e+00 : f32
    %405 = vector.broadcast %cst_102 : f32 to vector<8x512xf32>
    %406 = arith.maximumf %404, %405 : vector<8x512xf32>
    %407 = vector.broadcast %397 : f32 to vector<8x512xf32>
    %408 = arith.mulf %406, %407 : vector<8x512xf32>
    %409 = arith.addf %389, %408 : vector<8x512xf32>
    %c20_i32 = arith.constant 20 : i32
    %c0_103 = arith.constant 0 : index
    %410 = arith.index_cast %c20_i32 : i32 to index
    %411 = memref.load %arg1[%c0_103, %410] : memref<5x32xf32, #tpu.memory_space<smem>>
    %c1_104 = arith.constant 1 : index
    %412 = arith.index_cast %c20_i32 : i32 to index
    %413 = memref.load %arg1[%c1_104, %412] : memref<5x32xf32, #tpu.memory_space<smem>>
    %c2_105 = arith.constant 2 : index
    %414 = arith.index_cast %c20_i32 : i32 to index
    %415 = memref.load %arg1[%c2_105, %414] : memref<5x32xf32, #tpu.memory_space<smem>>
    %c3_106 = arith.constant 3 : index
    %416 = arith.index_cast %c20_i32 : i32 to index
    %417 = memref.load %arg1[%c3_106, %416] : memref<5x32xf32, #tpu.memory_space<smem>>
    %418 = vector.broadcast %411 : f32 to vector<8x512xf32>
    %419 = arith.mulf %5, %418 : vector<8x512xf32>
    %420 = vector.broadcast %413 : f32 to vector<8x512xf32>
    %421 = arith.mulf %8, %420 : vector<8x512xf32>
    %422 = arith.addf %419, %421 : vector<8x512xf32>
    %423 = vector.broadcast %415 : f32 to vector<8x512xf32>
    %424 = arith.addf %422, %423 : vector<8x512xf32>
    %cst_107 = arith.constant 0.000000e+00 : f32
    %425 = vector.broadcast %cst_107 : f32 to vector<8x512xf32>
    %426 = arith.maximumf %424, %425 : vector<8x512xf32>
    %427 = vector.broadcast %417 : f32 to vector<8x512xf32>
    %428 = arith.mulf %426, %427 : vector<8x512xf32>
    %429 = arith.addf %409, %428 : vector<8x512xf32>
    %c21_i32 = arith.constant 21 : i32
    %c0_108 = arith.constant 0 : index
    %430 = arith.index_cast %c21_i32 : i32 to index
    %431 = memref.load %arg1[%c0_108, %430] : memref<5x32xf32, #tpu.memory_space<smem>>
    %c1_109 = arith.constant 1 : index
    %432 = arith.index_cast %c21_i32 : i32 to index
    %433 = memref.load %arg1[%c1_109, %432] : memref<5x32xf32, #tpu.memory_space<smem>>
    %c2_110 = arith.constant 2 : index
    %434 = arith.index_cast %c21_i32 : i32 to index
    %435 = memref.load %arg1[%c2_110, %434] : memref<5x32xf32, #tpu.memory_space<smem>>
    %c3_111 = arith.constant 3 : index
    %436 = arith.index_cast %c21_i32 : i32 to index
    %437 = memref.load %arg1[%c3_111, %436] : memref<5x32xf32, #tpu.memory_space<smem>>
    %438 = vector.broadcast %431 : f32 to vector<8x512xf32>
    %439 = arith.mulf %5, %438 : vector<8x512xf32>
    %440 = vector.broadcast %433 : f32 to vector<8x512xf32>
    %441 = arith.mulf %8, %440 : vector<8x512xf32>
    %442 = arith.addf %439, %441 : vector<8x512xf32>
    %443 = vector.broadcast %435 : f32 to vector<8x512xf32>
    %444 = arith.addf %442, %443 : vector<8x512xf32>
    %cst_112 = arith.constant 0.000000e+00 : f32
    %445 = vector.broadcast %cst_112 : f32 to vector<8x512xf32>
    %446 = arith.maximumf %444, %445 : vector<8x512xf32>
    %447 = vector.broadcast %437 : f32 to vector<8x512xf32>
    %448 = arith.mulf %446, %447 : vector<8x512xf32>
    %449 = arith.addf %429, %448 : vector<8x512xf32>
    %c22_i32 = arith.constant 22 : i32
    %c0_113 = arith.constant 0 : index
    %450 = arith.index_cast %c22_i32 : i32 to index
    %451 = memref.load %arg1[%c0_113, %450] : memref<5x32xf32, #tpu.memory_space<smem>>
    %c1_114 = arith.constant 1 : index
    %452 = arith.index_cast %c22_i32 : i32 to index
    %453 = memref.load %arg1[%c1_114, %452] : memref<5x32xf32, #tpu.memory_space<smem>>
    %c2_115 = arith.constant 2 : index
    %454 = arith.index_cast %c22_i32 : i32 to index
    %455 = memref.load %arg1[%c2_115, %454] : memref<5x32xf32, #tpu.memory_space<smem>>
    %c3_116 = arith.constant 3 : index
    %456 = arith.index_cast %c22_i32 : i32 to index
    %457 = memref.load %arg1[%c3_116, %456] : memref<5x32xf32, #tpu.memory_space<smem>>
    %458 = vector.broadcast %451 : f32 to vector<8x512xf32>
    %459 = arith.mulf %5, %458 : vector<8x512xf32>
    %460 = vector.broadcast %453 : f32 to vector<8x512xf32>
    %461 = arith.mulf %8, %460 : vector<8x512xf32>
    %462 = arith.addf %459, %461 : vector<8x512xf32>
    %463 = vector.broadcast %455 : f32 to vector<8x512xf32>
    %464 = arith.addf %462, %463 : vector<8x512xf32>
    %cst_117 = arith.constant 0.000000e+00 : f32
    %465 = vector.broadcast %cst_117 : f32 to vector<8x512xf32>
    %466 = arith.maximumf %464, %465 : vector<8x512xf32>
    %467 = vector.broadcast %457 : f32 to vector<8x512xf32>
    %468 = arith.mulf %466, %467 : vector<8x512xf32>
    %469 = arith.addf %449, %468 : vector<8x512xf32>
    %c23_i32 = arith.constant 23 : i32
    %c0_118 = arith.constant 0 : index
    %470 = arith.index_cast %c23_i32 : i32 to index
    %471 = memref.load %arg1[%c0_118, %470] : memref<5x32xf32, #tpu.memory_space<smem>>
    %c1_119 = arith.constant 1 : index
    %472 = arith.index_cast %c23_i32 : i32 to index
    %473 = memref.load %arg1[%c1_119, %472] : memref<5x32xf32, #tpu.memory_space<smem>>
    %c2_120 = arith.constant 2 : index
    %474 = arith.index_cast %c23_i32 : i32 to index
    %475 = memref.load %arg1[%c2_120, %474] : memref<5x32xf32, #tpu.memory_space<smem>>
    %c3_121 = arith.constant 3 : index
    %476 = arith.index_cast %c23_i32 : i32 to index
    %477 = memref.load %arg1[%c3_121, %476] : memref<5x32xf32, #tpu.memory_space<smem>>
    %478 = vector.broadcast %471 : f32 to vector<8x512xf32>
    %479 = arith.mulf %5, %478 : vector<8x512xf32>
    %480 = vector.broadcast %473 : f32 to vector<8x512xf32>
    %481 = arith.mulf %8, %480 : vector<8x512xf32>
    %482 = arith.addf %479, %481 : vector<8x512xf32>
    %483 = vector.broadcast %475 : f32 to vector<8x512xf32>
    %484 = arith.addf %482, %483 : vector<8x512xf32>
    %cst_122 = arith.constant 0.000000e+00 : f32
    %485 = vector.broadcast %cst_122 : f32 to vector<8x512xf32>
    %486 = arith.maximumf %484, %485 : vector<8x512xf32>
    %487 = vector.broadcast %477 : f32 to vector<8x512xf32>
    %488 = arith.mulf %486, %487 : vector<8x512xf32>
    %489 = arith.addf %469, %488 : vector<8x512xf32>
    %c24_i32 = arith.constant 24 : i32
    %c0_123 = arith.constant 0 : index
    %490 = arith.index_cast %c24_i32 : i32 to index
    %491 = memref.load %arg1[%c0_123, %490] : memref<5x32xf32, #tpu.memory_space<smem>>
    %c1_124 = arith.constant 1 : index
    %492 = arith.index_cast %c24_i32 : i32 to index
    %493 = memref.load %arg1[%c1_124, %492] : memref<5x32xf32, #tpu.memory_space<smem>>
    %c2_125 = arith.constant 2 : index
    %494 = arith.index_cast %c24_i32 : i32 to index
    %495 = memref.load %arg1[%c2_125, %494] : memref<5x32xf32, #tpu.memory_space<smem>>
    %c3_126 = arith.constant 3 : index
    %496 = arith.index_cast %c24_i32 : i32 to index
    %497 = memref.load %arg1[%c3_126, %496] : memref<5x32xf32, #tpu.memory_space<smem>>
    %498 = vector.broadcast %491 : f32 to vector<8x512xf32>
    %499 = arith.mulf %5, %498 : vector<8x512xf32>
    %500 = vector.broadcast %493 : f32 to vector<8x512xf32>
    %501 = arith.mulf %8, %500 : vector<8x512xf32>
    %502 = arith.addf %499, %501 : vector<8x512xf32>
    %503 = vector.broadcast %495 : f32 to vector<8x512xf32>
    %504 = arith.addf %502, %503 : vector<8x512xf32>
    %cst_127 = arith.constant 0.000000e+00 : f32
    %505 = vector.broadcast %cst_127 : f32 to vector<8x512xf32>
    %506 = arith.maximumf %504, %505 : vector<8x512xf32>
    %507 = vector.broadcast %497 : f32 to vector<8x512xf32>
    %508 = arith.mulf %506, %507 : vector<8x512xf32>
    %509 = arith.addf %489, %508 : vector<8x512xf32>
    %c25_i32 = arith.constant 25 : i32
    %c0_128 = arith.constant 0 : index
    %510 = arith.index_cast %c25_i32 : i32 to index
    %511 = memref.load %arg1[%c0_128, %510] : memref<5x32xf32, #tpu.memory_space<smem>>
    %c1_129 = arith.constant 1 : index
    %512 = arith.index_cast %c25_i32 : i32 to index
    %513 = memref.load %arg1[%c1_129, %512] : memref<5x32xf32, #tpu.memory_space<smem>>
    %c2_130 = arith.constant 2 : index
    %514 = arith.index_cast %c25_i32 : i32 to index
    %515 = memref.load %arg1[%c2_130, %514] : memref<5x32xf32, #tpu.memory_space<smem>>
    %c3_131 = arith.constant 3 : index
    %516 = arith.index_cast %c25_i32 : i32 to index
    %517 = memref.load %arg1[%c3_131, %516] : memref<5x32xf32, #tpu.memory_space<smem>>
    %518 = vector.broadcast %511 : f32 to vector<8x512xf32>
    %519 = arith.mulf %5, %518 : vector<8x512xf32>
    %520 = vector.broadcast %513 : f32 to vector<8x512xf32>
    %521 = arith.mulf %8, %520 : vector<8x512xf32>
    %522 = arith.addf %519, %521 : vector<8x512xf32>
    %523 = vector.broadcast %515 : f32 to vector<8x512xf32>
    %524 = arith.addf %522, %523 : vector<8x512xf32>
    %cst_132 = arith.constant 0.000000e+00 : f32
    %525 = vector.broadcast %cst_132 : f32 to vector<8x512xf32>
    %526 = arith.maximumf %524, %525 : vector<8x512xf32>
    %527 = vector.broadcast %517 : f32 to vector<8x512xf32>
    %528 = arith.mulf %526, %527 : vector<8x512xf32>
    %529 = arith.addf %509, %528 : vector<8x512xf32>
    %c26_i32 = arith.constant 26 : i32
    %c0_133 = arith.constant 0 : index
    %530 = arith.index_cast %c26_i32 : i32 to index
    %531 = memref.load %arg1[%c0_133, %530] : memref<5x32xf32, #tpu.memory_space<smem>>
    %c1_134 = arith.constant 1 : index
    %532 = arith.index_cast %c26_i32 : i32 to index
    %533 = memref.load %arg1[%c1_134, %532] : memref<5x32xf32, #tpu.memory_space<smem>>
    %c2_135 = arith.constant 2 : index
    %534 = arith.index_cast %c26_i32 : i32 to index
    %535 = memref.load %arg1[%c2_135, %534] : memref<5x32xf32, #tpu.memory_space<smem>>
    %c3_136 = arith.constant 3 : index
    %536 = arith.index_cast %c26_i32 : i32 to index
    %537 = memref.load %arg1[%c3_136, %536] : memref<5x32xf32, #tpu.memory_space<smem>>
    %538 = vector.broadcast %531 : f32 to vector<8x512xf32>
    %539 = arith.mulf %5, %538 : vector<8x512xf32>
    %540 = vector.broadcast %533 : f32 to vector<8x512xf32>
    %541 = arith.mulf %8, %540 : vector<8x512xf32>
    %542 = arith.addf %539, %541 : vector<8x512xf32>
    %543 = vector.broadcast %535 : f32 to vector<8x512xf32>
    %544 = arith.addf %542, %543 : vector<8x512xf32>
    %cst_137 = arith.constant 0.000000e+00 : f32
    %545 = vector.broadcast %cst_137 : f32 to vector<8x512xf32>
    %546 = arith.maximumf %544, %545 : vector<8x512xf32>
    %547 = vector.broadcast %537 : f32 to vector<8x512xf32>
    %548 = arith.mulf %546, %547 : vector<8x512xf32>
    %549 = arith.addf %529, %548 : vector<8x512xf32>
    %c27_i32 = arith.constant 27 : i32
    %c0_138 = arith.constant 0 : index
    %550 = arith.index_cast %c27_i32 : i32 to index
    %551 = memref.load %arg1[%c0_138, %550] : memref<5x32xf32, #tpu.memory_space<smem>>
    %c1_139 = arith.constant 1 : index
    %552 = arith.index_cast %c27_i32 : i32 to index
    %553 = memref.load %arg1[%c1_139, %552] : memref<5x32xf32, #tpu.memory_space<smem>>
    %c2_140 = arith.constant 2 : index
    %554 = arith.index_cast %c27_i32 : i32 to index
    %555 = memref.load %arg1[%c2_140, %554] : memref<5x32xf32, #tpu.memory_space<smem>>
    %c3_141 = arith.constant 3 : index
    %556 = arith.index_cast %c27_i32 : i32 to index
    %557 = memref.load %arg1[%c3_141, %556] : memref<5x32xf32, #tpu.memory_space<smem>>
    %558 = vector.broadcast %551 : f32 to vector<8x512xf32>
    %559 = arith.mulf %5, %558 : vector<8x512xf32>
    %560 = vector.broadcast %553 : f32 to vector<8x512xf32>
    %561 = arith.mulf %8, %560 : vector<8x512xf32>
    %562 = arith.addf %559, %561 : vector<8x512xf32>
    %563 = vector.broadcast %555 : f32 to vector<8x512xf32>
    %564 = arith.addf %562, %563 : vector<8x512xf32>
    %cst_142 = arith.constant 0.000000e+00 : f32
    %565 = vector.broadcast %cst_142 : f32 to vector<8x512xf32>
    %566 = arith.maximumf %564, %565 : vector<8x512xf32>
    %567 = vector.broadcast %557 : f32 to vector<8x512xf32>
    %568 = arith.mulf %566, %567 : vector<8x512xf32>
    %569 = arith.addf %549, %568 : vector<8x512xf32>
    %c28_i32 = arith.constant 28 : i32
    %c0_143 = arith.constant 0 : index
    %570 = arith.index_cast %c28_i32 : i32 to index
    %571 = memref.load %arg1[%c0_143, %570] : memref<5x32xf32, #tpu.memory_space<smem>>
    %c1_144 = arith.constant 1 : index
    %572 = arith.index_cast %c28_i32 : i32 to index
    %573 = memref.load %arg1[%c1_144, %572] : memref<5x32xf32, #tpu.memory_space<smem>>
    %c2_145 = arith.constant 2 : index
    %574 = arith.index_cast %c28_i32 : i32 to index
    %575 = memref.load %arg1[%c2_145, %574] : memref<5x32xf32, #tpu.memory_space<smem>>
    %c3_146 = arith.constant 3 : index
    %576 = arith.index_cast %c28_i32 : i32 to index
    %577 = memref.load %arg1[%c3_146, %576] : memref<5x32xf32, #tpu.memory_space<smem>>
    %578 = vector.broadcast %571 : f32 to vector<8x512xf32>
    %579 = arith.mulf %5, %578 : vector<8x512xf32>
    %580 = vector.broadcast %573 : f32 to vector<8x512xf32>
    %581 = arith.mulf %8, %580 : vector<8x512xf32>
    %582 = arith.addf %579, %581 : vector<8x512xf32>
    %583 = vector.broadcast %575 : f32 to vector<8x512xf32>
    %584 = arith.addf %582, %583 : vector<8x512xf32>
    %cst_147 = arith.constant 0.000000e+00 : f32
    %585 = vector.broadcast %cst_147 : f32 to vector<8x512xf32>
    %586 = arith.maximumf %584, %585 : vector<8x512xf32>
    %587 = vector.broadcast %577 : f32 to vector<8x512xf32>
    %588 = arith.mulf %586, %587 : vector<8x512xf32>
    %589 = arith.addf %569, %588 : vector<8x512xf32>
    %c29_i32 = arith.constant 29 : i32
    %c0_148 = arith.constant 0 : index
    %590 = arith.index_cast %c29_i32 : i32 to index
    %591 = memref.load %arg1[%c0_148, %590] : memref<5x32xf32, #tpu.memory_space<smem>>
    %c1_149 = arith.constant 1 : index
    %592 = arith.index_cast %c29_i32 : i32 to index
    %593 = memref.load %arg1[%c1_149, %592] : memref<5x32xf32, #tpu.memory_space<smem>>
    %c2_150 = arith.constant 2 : index
    %594 = arith.index_cast %c29_i32 : i32 to index
    %595 = memref.load %arg1[%c2_150, %594] : memref<5x32xf32, #tpu.memory_space<smem>>
    %c3_151 = arith.constant 3 : index
    %596 = arith.index_cast %c29_i32 : i32 to index
    %597 = memref.load %arg1[%c3_151, %596] : memref<5x32xf32, #tpu.memory_space<smem>>
    %598 = vector.broadcast %591 : f32 to vector<8x512xf32>
    %599 = arith.mulf %5, %598 : vector<8x512xf32>
    %600 = vector.broadcast %593 : f32 to vector<8x512xf32>
    %601 = arith.mulf %8, %600 : vector<8x512xf32>
    %602 = arith.addf %599, %601 : vector<8x512xf32>
    %603 = vector.broadcast %595 : f32 to vector<8x512xf32>
    %604 = arith.addf %602, %603 : vector<8x512xf32>
    %cst_152 = arith.constant 0.000000e+00 : f32
    %605 = vector.broadcast %cst_152 : f32 to vector<8x512xf32>
    %606 = arith.maximumf %604, %605 : vector<8x512xf32>
    %607 = vector.broadcast %597 : f32 to vector<8x512xf32>
    %608 = arith.mulf %606, %607 : vector<8x512xf32>
    %609 = arith.addf %589, %608 : vector<8x512xf32>
    %c30_i32 = arith.constant 30 : i32
    %c0_153 = arith.constant 0 : index
    %610 = arith.index_cast %c30_i32 : i32 to index
    %611 = memref.load %arg1[%c0_153, %610] : memref<5x32xf32, #tpu.memory_space<smem>>
    %c1_154 = arith.constant 1 : index
    %612 = arith.index_cast %c30_i32 : i32 to index
    %613 = memref.load %arg1[%c1_154, %612] : memref<5x32xf32, #tpu.memory_space<smem>>
    %c2_155 = arith.constant 2 : index
    %614 = arith.index_cast %c30_i32 : i32 to index
    %615 = memref.load %arg1[%c2_155, %614] : memref<5x32xf32, #tpu.memory_space<smem>>
    %c3_156 = arith.constant 3 : index
    %616 = arith.index_cast %c30_i32 : i32 to index
    %617 = memref.load %arg1[%c3_156, %616] : memref<5x32xf32, #tpu.memory_space<smem>>
    %618 = vector.broadcast %611 : f32 to vector<8x512xf32>
    %619 = arith.mulf %5, %618 : vector<8x512xf32>
    %620 = vector.broadcast %613 : f32 to vector<8x512xf32>
    %621 = arith.mulf %8, %620 : vector<8x512xf32>
    %622 = arith.addf %619, %621 : vector<8x512xf32>
    %623 = vector.broadcast %615 : f32 to vector<8x512xf32>
    %624 = arith.addf %622, %623 : vector<8x512xf32>
    %cst_157 = arith.constant 0.000000e+00 : f32
    %625 = vector.broadcast %cst_157 : f32 to vector<8x512xf32>
    %626 = arith.maximumf %624, %625 : vector<8x512xf32>
    %627 = vector.broadcast %617 : f32 to vector<8x512xf32>
    %628 = arith.mulf %626, %627 : vector<8x512xf32>
    %629 = arith.addf %609, %628 : vector<8x512xf32>
    %c31_i32 = arith.constant 31 : i32
    %c0_158 = arith.constant 0 : index
    %630 = arith.index_cast %c31_i32 : i32 to index
    %631 = memref.load %arg1[%c0_158, %630] : memref<5x32xf32, #tpu.memory_space<smem>>
    %c1_159 = arith.constant 1 : index
    %632 = arith.index_cast %c31_i32 : i32 to index
    %633 = memref.load %arg1[%c1_159, %632] : memref<5x32xf32, #tpu.memory_space<smem>>
    %c2_160 = arith.constant 2 : index
    %634 = arith.index_cast %c31_i32 : i32 to index
    %635 = memref.load %arg1[%c2_160, %634] : memref<5x32xf32, #tpu.memory_space<smem>>
    %c3_161 = arith.constant 3 : index
    %636 = arith.index_cast %c31_i32 : i32 to index
    %637 = memref.load %arg1[%c3_161, %636] : memref<5x32xf32, #tpu.memory_space<smem>>
    %638 = vector.broadcast %631 : f32 to vector<8x512xf32>
    %639 = arith.mulf %5, %638 : vector<8x512xf32>
    %640 = vector.broadcast %633 : f32 to vector<8x512xf32>
    %641 = arith.mulf %8, %640 : vector<8x512xf32>
    %642 = arith.addf %639, %641 : vector<8x512xf32>
    %643 = vector.broadcast %635 : f32 to vector<8x512xf32>
    %644 = arith.addf %642, %643 : vector<8x512xf32>
    %cst_162 = arith.constant 0.000000e+00 : f32
    %645 = vector.broadcast %cst_162 : f32 to vector<8x512xf32>
    %646 = arith.maximumf %644, %645 : vector<8x512xf32>
    %647 = vector.broadcast %637 : f32 to vector<8x512xf32>
    %648 = arith.mulf %646, %647 : vector<8x512xf32>
    %649 = arith.addf %629, %648 : vector<8x512xf32>
    %c32_i32 = arith.constant 32 : i32
    %650 = arith.index_cast %2 : i32 to index
    %c0_163 = arith.constant 0 : index
    %c0_164 = arith.constant 0 : index
    %651 = vector.load %arg4[%650, %c0_163, %c0_164] : memref<1x8x512xf32, #tpu.memory_space<vmem>>, vector<1x8x512xf32>
    %652 = vector.shape_cast %651 : vector<1x8x512xf32> to vector<8x512xf32>
    %653 = vector.shape_cast %649 : vector<8x512xf32> to vector<1x8x512xf32>
    tpu.vector_store %arg4[%650, %c0_163, %c0_164], %653 {strides = array<i32>} : memref<1x8x512xf32, #tpu.memory_space<vmem>>, vector<1x8x512xf32>,
    %c1_i32_165 = arith.constant 1 : i32
    return
  }
  func.func @transform_0(%arg0: i32) -> (i32, i32) {
    %c0_i32 = arith.constant 0 : i32
    %c0_i32_0 = arith.constant 0 : i32
    %c0_i32_1 = arith.constant 0 : i32
    return %c0_i32, %c0_i32_0 : i32, i32
  }
  func.func @transform_1(%arg0: i32) -> (i32, i32, i32) {
    %c0_i32 = arith.constant 0 : i32
    %c0_i32_0 = arith.constant 0 : i32
    %c0_i32_1 = arith.constant 0 : i32
    return %arg0, %c0_i32, %c0_i32_0 : i32, i32, i32
  }
  func.func @transform_2(%arg0: i32) -> (i32, i32, i32) {
    %c0_i32 = arith.constant 0 : i32
    %c0_i32_0 = arith.constant 0 : i32
    %c0_i32_1 = arith.constant 0 : i32
    return %arg0, %c0_i32, %c0_i32_0 : i32, i32, i32
  }
  func.func @transform_3(%arg0: i32) -> (i32, i32, i32) {
    %c0_i32 = arith.constant 0 : i32
    %c0_i32_0 = arith.constant 0 : i32
    %c0_i32_1 = arith.constant 0 : i32
    return %arg0, %c0_i32, %c0_i32_0 : i32, i32, i32
  }
}

</mosaic_0001>

<bundles_post_ra>
// kernel: tpu_custom_call.1
= control target key start
LH: loop header
LB: loop body
LE: loop exit
PB: predicated region body
PF: predicated region fallthrough
CT: control target
= control target key end

     0   :  { %8 = vsyncpa [#allocation5], 0  ;;  %s2144_s0 = inlined_call_operand.hbm [shape: f32[5,32], index: 0, kind: input, shape index: {}]   ;;  %s2145_s1 = inlined_call_operand.hbm [shape: f32[1,8,512], index: 1, kind: input, shape index: {}]   ;;  %s2146_s2 = inlined_call_operand.hbm [shape: f32[1,8,512], index: 2, kind: input, shape index: {}]   ;;  %s2147_s3 = inlined_call_operand.hbm [shape: f32[1,8,512], index: 3, kind: output, shape index: {}]  }
   0x1   :  { %9 = vsyncpa [#allocation3], 0 }
   0x2   :  { %10 = vsyncpa [#allocation8], 0 }
   0x3   :  { %11 = vsyncpa [#allocation4], 0  ;;  %s1457_s12 = smov [#allocation2]   ;;  %s1458_s15 = smov [#allocation6]  }
   0x4   :  { %19 = dma.hbm_to_smem %s2144_s0, 128, %s1457_s12, [#allocation5]  }
   0x5   :  { %s26_s16 = sshll.u32 %s1458_s15, 4  ;;  %s1459_s17 = smov [#allocation7]   ;;  %s27_s16 = int_to_ptr.vmem [resolvable:$true] %s26_s16 }
   0x6   :  { %s36_s18 = sshll.u32 %s1459_s17, 4  ;;  %s1397_s19 = scalar_lea.vmem %s27_s16, 512  ;;  %s37_s18 = int_to_ptr.vmem [resolvable:$true] %s36_s18 }
   0x7   :  { %p1398_p0 = scmp.ne.s32.totalorder %s27_s16, %s1397_s19  ;;  %p1402_p1 = scmp.lt.s32.totalorder %s27_s16, %s27_s16 }
   0x8   :  { %p1403_p2 = scmp.lt.s32.totalorder %s1397_s19, %s1397_s19 }
   0xa   :  { %p1404_p3 = por %p1403_p2, %p1402_p1 }
   0xc   :  { %p1405_p4 = pnand %p1404_p3, %p1398_p0 }
   0xe   :  { %1408 = shalt.err (!%p1405_p4)
}
   0xf   :  { %29 = dma.hbm_to_vmem [thread:$0]  %s2145_s1, 512, %s27_s16, [#allocation3]  }
  0x10   :  { %s1417_s22 = scalar_lea.vmem %s37_s18, 512  ;;  %p1422_p6 = scmp.lt.s32.totalorder %s37_s18, %s37_s18 }
  0x11   :  { %p1418_p5 = scmp.ne.s32.totalorder %s37_s18, %s1417_s22  ;;  %p1423_p7 = scmp.lt.s32.totalorder %s1417_s22, %s1417_s22 }
  0x13   :  { %p1424_p8 = por %p1423_p7, %p1422_p6 }
  0x15   :  { %p1425_p9 = pnand %p1424_p8, %p1418_p5 }
  0x17   :  { %1428 = shalt.err (!%p1425_p9)
}
  0x18   :  { %39 = dma.hbm_to_vmem [thread:$0]  %s2146_s2, 512, %s37_s18, [#allocation8]  }
  0x19   :  { %1449 = dma.done.wait [#allocation5], 128  }
  0x1a   :  { %1450 = vsyncadd [#allocation5], 4294967168 }
  0x1b   :  { %1451 = dma.done.wait [#allocation3], 512  }
  0x1c   :  { %1452 = vsyncadd [#allocation3], 4294966784 }
  0x1d   :  { %1453 = dma.done.wait [#allocation8], 512  }
  0x1e   :  { %1454 = vsyncadd [#allocation8], 4294966784 }
  0x1f   :  { %49 = sfence }
  0x20   :  { %s1233_s1 = sld [smem:[#allocation2 + $0x200]]  ;;  %v1490_v0 = vld [vmem:[#allocation6] sm:$0xff]  ;;  %v1492_v1 = vld [vmem:[#allocation6 + $0x8] sm:$0xff]  ;;  %v1494_v2 = vld [vmem:[#allocation6 + $0x10] sm:$0xff] }
  0x21   :  { %s60_s24 = sld [smem:[#allocation2]]  ;;  %v1496_v3 = vld [vmem:[#allocation6 + $0x18] sm:$0xff]  ;;  %v1498_v4 = vld [vmem:[#allocation7] sm:$0xff]  ;;  %v1502_v5 = vld [vmem:[#allocation7 + $0x8] sm:$0xff] }
  0x22   :  { %s1234_s25 = sld [smem:[#allocation2 + $0x80]]  ;;  %v1504_v6 = vld [vmem:[#allocation7 + $0x10] sm:$0xff]  ;;  %v1506_v7 = vld [vmem:[#allocation7 + $0x18] sm:$0xff] }
  0x23   :  { %s1235_s26 = sld [smem:[#allocation2 + $0x100]] }
  0x24   :  { %s1236_s27 = sld [smem:[#allocation2 + $0x180]] }
  0x25   :  { %s1237_s2 = sld [smem:[#allocation2 + $0x1]] }
  0x26   :  { %s1500_s28 = sld [smem:[#allocation2 + $0x81]]  ;;  %v59_v18 = vstv %s1233_s1 }
  0x27   :  { %v64_v8 = vstv %s60_s24  ;;  %s1508_s29 = sld [smem:[#allocation2 + $0x101]] }
  0x28   :  { %v65_v9 = vmul.f32 %v64_v8, %v1490_v0  ;;  %v66_v10 = vmul.f32 %v64_v8, %v1492_v1  ;;  %v67_v11 = vmul.f32 %v64_v8, %v1494_v2  ;;  %v68_v12 = vmul.f32 %v64_v8, %v1496_v3  ;;  %s1241_s30 = sld [smem:[#allocation2 + $0x2]] }
  0x29   :  { %v69_v13 = vstv %s1234_s25  ;;  %v78_v19 = vstv %s1235_s26  ;;  %s1518_s4 = sld [smem:[#allocation2 + $0x181]] }
  0x2a   :  { %v70_v14 = vmul.f32 %v69_v13, %v1498_v4  ;;  %v71_v15 = vmul.f32 %v69_v13, %v1502_v5  ;;  %v72_v16 = vmul.f32 %v69_v13, %v1504_v6  ;;  %v73_v17 = vmul.f32 %v69_v13, %v1506_v7  ;;  %s1523_s5 = sld [smem:[#allocation2 + $0x82]] }
  0x2b   :  { %v100_v20 = vstv %s1237_s2  ;;  %v87_v25 = vstv %s1236_s27  ;;  %s1528_s6 = sld [smem:[#allocation2 + $0x102]] }
  0x2c   :  { %v74_v21 = vadd.f32 %v70_v14, %v65_v9  ;;  %v75_v22 = vadd.f32 %v71_v15, %v66_v10  ;;  %v76_v23 = vadd.f32 %v72_v16, %v67_v11  ;;  %v77_v24 = vadd.f32 %v73_v17, %v68_v12  ;;  %s1530_s7 = sld [smem:[#allocation2 + $0x3]] }
  0x2d   :  { %v101_v26 = vmul.f32 %v100_v20, %v1490_v0  ;;  %v102_v27 = vmul.f32 %v100_v20, %v1492_v1  ;;  %v103_v28 = vmul.f32 %v100_v20, %v1494_v2  ;;  %v104_v33 = vmul.f32 %v100_v20, %v1496_v3  ;;  %s1536_s8 = sld [smem:[#allocation2 + $0x182]] }
  0x2e   :  { %v79_v29 = vadd.f32 %v78_v19, %v74_v21  ;;  %v80_v30 = vadd.f32 %v78_v19, %v75_v22  ;;  %v81_v31 = vadd.f32 %v78_v19, %v76_v23  ;;  %v82_v32 = vadd.f32 %v78_v19, %v77_v24  ;;  %s1539_s9 = sld [smem:[#allocation2 + $0x83]] }
  0x2f   :  { %v105_v34 = vstv %s1500_s28  ;;  %v114_v35 = vstv %s1508_s29  ;;  %v136_v36 = vstv %s1241_s30  ;;  %v123_v56 = vstv %s1518_s4  ;;  %s1544_s10 = sld [smem:[#allocation2 + $0x103]] }
  0x30   :  { %v83_v37 = vmax.f32 %v79_v29, 0.0  ;;  %v84_v38 = vmax.f32 %v80_v30, 0.0  ;;  %v85_v39 = vmax.f32 %v81_v31, 0.0  ;;  %v86_v40 = vmax.f32 %v82_v32, 0.0  ;;  %s1546_s11 = sld [smem:[#allocation2 + $0x4]] }
  0x31   :  { %v106_v41 = vmul.f32 %v105_v34, %v1498_v4  ;;  %v107_v42 = vmul.f32 %v105_v34, %v1502_v5  ;;  %v108_v43 = vmul.f32 %v105_v34, %v1504_v6  ;;  %v109_v44 = vmul.f32 %v105_v34, %v1506_v7  ;;  %s1557_s12 = sld [smem:[#allocation2 + $0x183]] }
  0x32   :  { %v88_v45 = vmul.f32 %v87_v25, %v83_v37  ;;  %v89_v46 = vmul.f32 %v87_v25, %v84_v38  ;;  %v90_v47 = vmul.f32 %v87_v25, %v85_v39  ;;  %v91_v48 = vmul.f32 %v87_v25, %v86_v40  ;;  %s1562_s13 = sld [smem:[#allocation2 + $0x84]] }
  0x33   :  { %v110_v49 = vadd.f32 %v106_v41, %v101_v26  ;;  %v111_v50 = vadd.f32 %v107_v42, %v102_v27  ;;  %v112_v51 = vadd.f32 %v108_v43, %v103_v28  ;;  %v113_v52 = vadd.f32 %v109_v44, %v104_v33  ;;  %s1567_s14 = sld [smem:[#allocation2 + $0x104]] }
  0x34   :  { %v92_v53 = vadd.f32 %v88_v45, %v59_v18  ;;  %v93_v54 = vadd.f32 %v89_v46, %v59_v18  ;;  %v94_v55 = vadd.f32 %v90_v47, %v59_v18  ;;  %v95_v61 = vadd.f32 %v91_v48, %v59_v18  ;;  %s1570_s15 = sld [smem:[#allocation2 + $0x5]] }
  0x35   :  { %v115_v57 = vadd.f32 %v114_v35, %v110_v49  ;;  %v116_v58 = vadd.f32 %v114_v35, %v111_v50  ;;  %v117_v59 = vadd.f32 %v114_v35, %v112_v51  ;;  %v118_v60 = vadd.f32 %v114_v35, %v113_v52  ;;  %s1576_s16 = sld [smem:[#allocation2 + $0x184]] }
  0x36   :  { %v137_v62 = vmul.f32 %v136_v36, %v1490_v0  ;;  %v138_v63 = vmul.f32 %v136_v36, %v1492_v1  ;;  %v139_v8 = vmul.f32 %v136_v36, %v1494_v2  ;;  %v140_v13 = vmul.f32 %v136_v36, %v1496_v3  ;;  %s1579_s17 = sld [smem:[#allocation2 + $0x85]] }
  0x37   :  { %v119_v9 = vmax.f32 %v115_v57, 0.0  ;;  %v120_v10 = vmax.f32 %v116_v58, 0.0  ;;  %v121_v11 = vmax.f32 %v117_v59, 0.0  ;;  %v122_v12 = vmax.f32 %v118_v60, 0.0  ;;  %s1584_s18 = sld [smem:[#allocation2 + $0x105]] }
  0x38   :  { %v141_v14 = vstv %s1523_s5  ;;  %v150_v15 = vstv %s1528_s6  ;;  %v172_v16 = vstv %s1530_s7  ;;  %v159_v28 = vstv %s1536_s8  ;;  %s1586_s19 = sld [smem:[#allocation2 + $0x6]] }
  0x39   :  { %v124_v17 = vmul.f32 %v123_v56, %v119_v9  ;;  %v125_v18 = vmul.f32 %v123_v56, %v120_v10  ;;  %v126_v19 = vmul.f32 %v123_v56, %v121_v11  ;;  %v127_v20 = vmul.f32 %v123_v56, %v122_v12  ;;  %s1597_s20 = sld [smem:[#allocation2 + $0x185]] }
  0x3a   :  { %v142_v21 = vmul.f32 %v141_v14, %v1498_v4  ;;  %v143_v22 = vmul.f32 %v141_v14, %v1502_v5  ;;  %v144_v23 = vmul.f32 %v141_v14, %v1504_v6  ;;  %v145_v24 = vmul.f32 %v141_v14, %v1506_v7  ;;  %s1602_s21 = sld [smem:[#allocation2 + $0x86]] }
  0x3b   :  { %v128_v25 = vadd.f32 %v124_v17, %v92_v53  ;;  %v129_v26 = vadd.f32 %v125_v18, %v93_v54  ;;  %v130_v27 = vadd.f32 %v126_v19, %v94_v55  ;;  %v131_v33 = vadd.f32 %v127_v20, %v95_v61  ;;  %s1607_s22 = sld [smem:[#allocation2 + $0x106]] }
  0x3c   :  { %v146_v29 = vadd.f32 %v142_v21, %v137_v62  ;;  %v147_v30 = vadd.f32 %v143_v22, %v138_v63  ;;  %v148_v31 = vadd.f32 %v144_v23, %v139_v8  ;;  %v149_v32 = vadd.f32 %v145_v24, %v140_v13  ;;  %s1610_s0 = sld [smem:[#allocation2 + $0x7]] }
  0x3d   :  { %v173_v34 = vmul.f32 %v172_v16, %v1490_v0  ;;  %v174_v35 = vmul.f32 %v172_v16, %v1492_v1  ;;  %v175_v36 = vmul.f32 %v172_v16, %v1494_v2  ;;  %v176_v41 = vmul.f32 %v172_v16, %v1496_v3  ;;  %s1616_s23 = sld [smem:[#allocation2 + $0x186]] }
  0x3e   :  { %v151_v37 = vadd.f32 %v150_v15, %v146_v29  ;;  %v152_v38 = vadd.f32 %v150_v15, %v147_v30  ;;  %v153_v39 = vadd.f32 %v150_v15, %v148_v31  ;;  %v154_v40 = vadd.f32 %v150_v15, %v149_v32  ;;  %s1619_s1 = sld [smem:[#allocation2 + $0x87]] }
  0x3f   :  { %v177_v42 = vstv %s1539_s9  ;;  %v186_v43 = vstv %s1544_s10  ;;  %v208_v44 = vstv %s1546_s11  ;;  %v195_v8 = vstv %s1557_s12  ;;  %s1624_s24 = sld [smem:[#allocation2 + $0x107]] }
  0x40   :  { %v155_v45 = vmax.f32 %v151_v37, 0.0  ;;  %v156_v46 = vmax.f32 %v152_v38, 0.0  ;;  %v157_v47 = vmax.f32 %v153_v39, 0.0  ;;  %v158_v48 = vmax.f32 %v154_v40, 0.0  ;;  %s1626_s25 = sld [smem:[#allocation2 + $0x8]] }
  0x41   :  { %v178_v49 = vmul.f32 %v177_v42, %v1498_v4  ;;  %v179_v50 = vmul.f32 %v177_v42, %v1502_v5  ;;  %v180_v51 = vmul.f32 %v177_v42, %v1504_v6  ;;  %v181_v52 = vmul.f32 %v177_v42, %v1506_v7  ;;  %s1637_s26 = sld [smem:[#allocation2 + $0x187]] }
  0x42   :  { %v160_v53 = vmul.f32 %v159_v28, %v155_v45  ;;  %v161_v54 = vmul.f32 %v159_v28, %v156_v46  ;;  %v162_v55 = vmul.f32 %v159_v28, %v157_v47  ;;  %v163_v56 = vmul.f32 %v159_v28, %v158_v48  ;;  %s1642_s27 = sld [smem:[#allocation2 + $0x88]] }
  0x43   :  { %v182_v57 = vadd.f32 %v178_v49, %v173_v34  ;;  %v183_v58 = vadd.f32 %v179_v50, %v174_v35  ;;  %v184_v59 = vadd.f32 %v180_v51, %v175_v36  ;;  %v185_v60 = vadd.f32 %v181_v52, %v176_v41  ;;  %s1647_s2 = sld [smem:[#allocation2 + $0x108]] }
  0x44   :  { %v164_v61 = vadd.f32 %v160_v53, %v128_v25  ;;  %v165_v62 = vadd.f32 %v161_v54, %v129_v26  ;;  %v166_v63 = vadd.f32 %v162_v55, %v130_v27  ;;  %v167_v13 = vadd.f32 %v163_v56, %v131_v33  ;;  %s1650_s28 = sld [smem:[#allocation2 + $0x9]] }
  0x45   :  { %v187_v9 = vadd.f32 %v186_v43, %v182_v57  ;;  %v188_v10 = vadd.f32 %v186_v43, %v183_v58  ;;  %v189_v11 = vadd.f32 %v186_v43, %v184_v59  ;;  %v190_v12 = vadd.f32 %v186_v43, %v185_v60  ;;  %s1656_s29 = sld [smem:[#allocation2 + $0x188]] }
  0x46   :  { %v209_v14 = vmul.f32 %v208_v44, %v1490_v0  ;;  %v210_v15 = vmul.f32 %v208_v44, %v1492_v1  ;;  %v211_v16 = vmul.f32 %v208_v44, %v1494_v2  ;;  %v212_v21 = vmul.f32 %v208_v44, %v1496_v3  ;;  %s1659_s30 = sld [smem:[#allocation2 + $0x89]] }
  0x47   :  { %v191_v17 = vmax.f32 %v187_v9, 0.0  ;;  %v192_v18 = vmax.f32 %v188_v10, 0.0  ;;  %v193_v19 = vmax.f32 %v189_v11, 0.0  ;;  %v194_v20 = vmax.f32 %v190_v12, 0.0  ;;  %s1664_s4 = sld [smem:[#allocation2 + $0x109]] }
  0x48   :  { %v213_v22 = vstv %s1562_s13  ;;  %v222_v23 = vstv %s1567_s14  ;;  %v244_v24 = vstv %s1570_s15  ;;  %v231_v36 = vstv %s1576_s16  ;;  %s1666_s5 = sld [smem:[#allocation2 + $0xa]] }
  0x49   :  { %v196_v25 = vmul.f32 %v195_v8, %v191_v17  ;;  %v197_v26 = vmul.f32 %v195_v8, %v192_v18  ;;  %v198_v27 = vmul.f32 %v195_v8, %v193_v19  ;;  %v199_v28 = vmul.f32 %v195_v8, %v194_v20  ;;  %s1677_s6 = sld [smem:[#allocation2 + $0x189]] }
  0x4a   :  { %v214_v29 = vmul.f32 %v213_v22, %v1498_v4  ;;  %v215_v30 = vmul.f32 %v213_v22, %v1502_v5  ;;  %v216_v31 = vmul.f32 %v213_v22, %v1504_v6  ;;  %v217_v32 = vmul.f32 %v213_v22, %v1506_v7  ;;  %s1682_s7 = sld [smem:[#allocation2 + $0x8a]] }
  0x4b   :  { %v200_v33 = vadd.f32 %v196_v25, %v164_v61  ;;  %v201_v34 = vadd.f32 %v197_v26, %v165_v62  ;;  %v202_v35 = vadd.f32 %v198_v27, %v166_v63  ;;  %v203_v41 = vadd.f32 %v199_v28, %v167_v13  ;;  %s1687_s8 = sld [smem:[#allocation2 + $0x10a]] }
  0x4c   :  { %v218_v37 = vadd.f32 %v214_v29, %v209_v14  ;;  %v219_v38 = vadd.f32 %v215_v30, %v210_v15  ;;  %v220_v39 = vadd.f32 %v216_v31, %v211_v16  ;;  %v221_v40 = vadd.f32 %v217_v32, %v212_v21  ;;  %s1690_s9 = sld [smem:[#allocation2 + $0xb]] }
  0x4d   :  { %v245_v42 = vmul.f32 %v244_v24, %v1490_v0  ;;  %v246_v43 = vmul.f32 %v244_v24, %v1492_v1  ;;  %v247_v44 = vmul.f32 %v244_v24, %v1494_v2  ;;  %v248_v49 = vmul.f32 %v244_v24, %v1496_v3  ;;  %s1696_s10 = sld [smem:[#allocation2 + $0x18a]] }
  0x4e   :  { %v223_v45 = vadd.f32 %v222_v23, %v218_v37  ;;  %v224_v46 = vadd.f32 %v222_v23, %v219_v38  ;;  %v225_v47 = vadd.f32 %v222_v23, %v220_v39  ;;  %v226_v48 = vadd.f32 %v222_v23, %v221_v40  ;;  %s1699_s11 = sld [smem:[#allocation2 + $0x8b]] }
  0x4f   :  { %v249_v50 = vstv %s1579_s17  ;;  %v258_v51 = vstv %s1584_s18  ;;  %v280_v52 = vstv %s1586_s19  ;;  %v267_v16 = vstv %s1597_s20  ;;  %s1704_s12 = sld [smem:[#allocation2 + $0x10b]] }
  0x50   :  { %v227_v53 = vmax.f32 %v223_v45, 0.0  ;;  %v228_v54 = vmax.f32 %v224_v46, 0.0  ;;  %v229_v55 = vmax.f32 %v225_v47, 0.0  ;;  %v230_v56 = vmax.f32 %v226_v48, 0.0  ;;  %s1706_s13 = sld [smem:[#allocation2 + $0xc]] }
  0x51   :  { %v250_v57 = vmul.f32 %v249_v50, %v1498_v4  ;;  %v251_v58 = vmul.f32 %v249_v50, %v1502_v5  ;;  %v252_v59 = vmul.f32 %v249_v50, %v1504_v6  ;;  %v253_v60 = vmul.f32 %v249_v50, %v1506_v7  ;;  %s1717_s14 = sld [smem:[#allocation2 + $0x18b]] }
  0x52   :  { %v232_v61 = vmul.f32 %v231_v36, %v227_v53  ;;  %v233_v62 = vmul.f32 %v231_v36, %v228_v54  ;;  %v234_v63 = vmul.f32 %v231_v36, %v229_v55  ;;  %v235_v8 = vmul.f32 %v231_v36, %v230_v56  ;;  %s1722_s15 = sld [smem:[#allocation2 + $0x8c]] }
  0x53   :  { %v254_v9 = vadd.f32 %v250_v57, %v245_v42  ;;  %v255_v10 = vadd.f32 %v251_v58, %v246_v43  ;;  %v256_v11 = vadd.f32 %v252_v59, %v247_v44  ;;  %v257_v12 = vadd.f32 %v253_v60, %v248_v49  ;;  %s1727_s16 = sld [smem:[#allocation2 + $0x10c]] }
  0x54   :  { %v236_v13 = vadd.f32 %v232_v61, %v200_v33  ;;  %v237_v14 = vadd.f32 %v233_v62, %v201_v34  ;;  %v238_v15 = vadd.f32 %v234_v63, %v202_v35  ;;  %v239_v21 = vadd.f32 %v235_v8, %v203_v41  ;;  %s1730_s17 = sld [smem:[#allocation2 + $0xd]] }
  0x55   :  { %v259_v17 = vadd.f32 %v258_v51, %v254_v9  ;;  %v260_v18 = vadd.f32 %v258_v51, %v255_v10  ;;  %v261_v19 = vadd.f32 %v258_v51, %v256_v11  ;;  %v262_v20 = vadd.f32 %v258_v51, %v257_v12  ;;  %s1736_s18 = sld [smem:[#allocation2 + $0x18c]] }
  0x56   :  { %v281_v22 = vmul.f32 %v280_v52, %v1490_v0  ;;  %v282_v23 = vmul.f32 %v280_v52, %v1492_v1  ;;  %v283_v24 = vmul.f32 %v280_v52, %v1494_v2  ;;  %v284_v29 = vmul.f32 %v280_v52, %v1496_v3  ;;  %s1739_s19 = sld [smem:[#allocation2 + $0x8d]] }
  0x57   :  { %v263_v25 = vmax.f32 %v259_v17, 0.0  ;;  %v264_v26 = vmax.f32 %v260_v18, 0.0  ;;  %v265_v27 = vmax.f32 %v261_v19, 0.0  ;;  %v266_v28 = vmax.f32 %v262_v20, 0.0  ;;  %s1744_s20 = sld [smem:[#allocation2 + $0x10d]] }
  0x58   :  { %v285_v30 = vstv %s1602_s21  ;;  %v294_v31 = vstv %s1607_s22  ;;  %v316_v32 = vstv %s1610_s0  ;;  %v303_v44 = vstv %s1616_s23  ;;  %s1746_s21 = sld [smem:[#allocation2 + $0xe]] }
  0x59   :  { %v268_v33 = vmul.f32 %v267_v16, %v263_v25  ;;  %v269_v34 = vmul.f32 %v267_v16, %v264_v26  ;;  %v270_v35 = vmul.f32 %v267_v16, %v265_v27  ;;  %v271_v36 = vmul.f32 %v267_v16, %v266_v28  ;;  %s1757_s22 = sld [smem:[#allocation2 + $0x18d]] }
  0x5a   :  { %v286_v37 = vmul.f32 %v285_v30, %v1498_v4  ;;  %v287_v38 = vmul.f32 %v285_v30, %v1502_v5  ;;  %v288_v39 = vmul.f32 %v285_v30, %v1504_v6  ;;  %v289_v40 = vmul.f32 %v285_v30, %v1506_v7  ;;  %s1762_s0 = sld [smem:[#allocation2 + $0x8e]] }
  0x5b   :  { %v272_v41 = vadd.f32 %v268_v33, %v236_v13  ;;  %v273_v42 = vadd.f32 %v269_v34, %v237_v14  ;;  %v274_v43 = vadd.f32 %v270_v35, %v238_v15  ;;  %v275_v49 = vadd.f32 %v271_v36, %v239_v21  ;;  %s1767_s23 = sld [smem:[#allocation2 + $0x10e]] }
  0x5c   :  { %v290_v45 = vadd.f32 %v286_v37, %v281_v22  ;;  %v291_v46 = vadd.f32 %v287_v38, %v282_v23  ;;  %v292_v47 = vadd.f32 %v288_v39, %v283_v24  ;;  %v293_v48 = vadd.f32 %v289_v40, %v284_v29 }
  0x5d   :  { %v317_v50 = vmul.f32 %v316_v32, %v1490_v0  ;;  %v318_v51 = vmul.f32 %v316_v32, %v1492_v1  ;;  %v319_v52 = vmul.f32 %v316_v32, %v1494_v2  ;;  %v320_v57 = vmul.f32 %v316_v32, %v1496_v3 }
  0x5e   :  { %v295_v53 = vadd.f32 %v294_v31, %v290_v45  ;;  %v296_v54 = vadd.f32 %v294_v31, %v291_v46  ;;  %v297_v55 = vadd.f32 %v294_v31, %v292_v47  ;;  %v298_v56 = vadd.f32 %v294_v31, %v293_v48 }
  0x5f   :  { %v321_v58 = vstv %s1619_s1  ;;  %v330_v59 = vstv %s1624_s24  ;;  %v352_v60 = vstv %s1626_s25  ;;  %v339_v24 = vstv %s1637_s26  ;;  %s1770_s1 = sld [smem:[#allocation2 + $0xf]] }
  0x60   :  { %v299_v61 = vmax.f32 %v295_v53, 0.0  ;;  %v300_v62 = vmax.f32 %v296_v54, 0.0  ;;  %v301_v63 = vmax.f32 %v297_v55, 0.0  ;;  %v302_v8 = vmax.f32 %v298_v56, 0.0  ;;  %s1776_s24 = sld [smem:[#allocation2 + $0x18e]] }
  0x61   :  { %v322_v9 = vmul.f32 %v321_v58, %v1498_v4  ;;  %v323_v10 = vmul.f32 %v321_v58, %v1502_v5  ;;  %v324_v11 = vmul.f32 %v321_v58, %v1504_v6  ;;  %v325_v12 = vmul.f32 %v321_v58, %v1506_v7  ;;  %s1779_s25 = sld [smem:[#allocation2 + $0x8f]] }
  0x62   :  { %v304_v13 = vmul.f32 %v303_v44, %v299_v61  ;;  %v305_v14 = vmul.f32 %v303_v44, %v300_v62  ;;  %v306_v15 = vmul.f32 %v303_v44, %v301_v63  ;;  %v307_v16 = vmul.f32 %v303_v44, %v302_v8  ;;  %s1784_s26 = sld [smem:[#allocation2 + $0x10f]] }
  0x63   :  { %v326_v17 = vadd.f32 %v322_v9, %v317_v50  ;;  %v327_v18 = vadd.f32 %v323_v10, %v318_v51  ;;  %v328_v19 = vadd.f32 %v324_v11, %v319_v52  ;;  %v329_v20 = vadd.f32 %v325_v12, %v320_v57 }
  0x64   :  { %v308_v21 = vadd.f32 %v304_v13, %v272_v41  ;;  %v309_v22 = vadd.f32 %v305_v14, %v273_v42  ;;  %v310_v23 = vadd.f32 %v306_v15, %v274_v43  ;;  %v311_v29 = vadd.f32 %v307_v16, %v275_v49 }
  0x65   :  { %v331_v25 = vadd.f32 %v330_v59, %v326_v17  ;;  %v332_v26 = vadd.f32 %v330_v59, %v327_v18  ;;  %v333_v27 = vadd.f32 %v330_v59, %v328_v19  ;;  %v334_v28 = vadd.f32 %v330_v59, %v329_v20 }
  0x66   :  { %v353_v30 = vmul.f32 %v352_v60, %v1490_v0  ;;  %v354_v31 = vmul.f32 %v352_v60, %v1492_v1  ;;  %v355_v32 = vmul.f32 %v352_v60, %v1494_v2  ;;  %v356_v37 = vmul.f32 %v352_v60, %v1496_v3 }
  0x67   :  { %v335_v33 = vmax.f32 %v331_v25, 0.0  ;;  %v336_v34 = vmax.f32 %v332_v26, 0.0  ;;  %v337_v35 = vmax.f32 %v333_v27, 0.0  ;;  %v338_v36 = vmax.f32 %v334_v28, 0.0 }
  0x68   :  { %v357_v38 = vstv %s1642_s27  ;;  %v366_v39 = vstv %s1647_s2  ;;  %v388_v40 = vstv %s1650_s28  ;;  %v375_v52 = vstv %s1656_s29  ;;  %s1786_s27 = sld [smem:[#allocation2 + $0x10]] }
  0x69   :  { %v340_v41 = vmul.f32 %v339_v24, %v335_v33  ;;  %v341_v42 = vmul.f32 %v339_v24, %v336_v34  ;;  %v342_v43 = vmul.f32 %v339_v24, %v337_v35  ;;  %v343_v44 = vmul.f32 %v339_v24, %v338_v36  ;;  %s1805_s2 = sld [smem:[#allocation2 + $0x18f]] }
  0x6a   :  { %v358_v45 = vmul.f32 %v357_v38, %v1498_v4  ;;  %v359_v46 = vmul.f32 %v357_v38, %v1502_v5  ;;  %v360_v47 = vmul.f32 %v357_v38, %v1504_v6  ;;  %v361_v48 = vmul.f32 %v357_v38, %v1506_v7  ;;  %s1816_s28 = sld [smem:[#allocation2 + $0x90]] }
  0x6b   :  { %v344_v49 = vadd.f32 %v340_v41, %v308_v21  ;;  %v345_v50 = vadd.f32 %v341_v42, %v309_v22  ;;  %v346_v51 = vadd.f32 %v342_v43, %v310_v23  ;;  %v347_v57 = vadd.f32 %v343_v44, %v311_v29  ;;  %s1823_s29 = sld [smem:[#allocation2 + $0x110]] }
  0x6c   :  { %v362_v53 = vadd.f32 %v358_v45, %v353_v30  ;;  %v363_v54 = vadd.f32 %v359_v46, %v354_v31  ;;  %v364_v55 = vadd.f32 %v360_v47, %v355_v32  ;;  %v365_v56 = vadd.f32 %v361_v48, %v356_v37 }
  0x6d   :  { %v389_v58 = vmul.f32 %v388_v40, %v1490_v0  ;;  %v390_v59 = vmul.f32 %v388_v40, %v1492_v1  ;;  %v391_v60 = vmul.f32 %v388_v40, %v1494_v2  ;;  %v392_v9 = vmul.f32 %v388_v40, %v1496_v3 }
  0x6e   :  { %v367_v61 = vadd.f32 %v366_v39, %v362_v53  ;;  %v368_v62 = vadd.f32 %v366_v39, %v363_v54  ;;  %v369_v63 = vadd.f32 %v366_v39, %v364_v55  ;;  %v370_v8 = vadd.f32 %v366_v39, %v365_v56 }
  0x6f   :  { %v393_v10 = vstv %s1659_s30  ;;  %v402_v11 = vstv %s1664_s4  ;;  %v424_v12 = vstv %s1666_s5  ;;  %v411_v32 = vstv %s1677_s6  ;;  %s1826_s30 = sld [smem:[#allocation2 + $0x11]] }
  0x70   :  { %v371_v13 = vmax.f32 %v367_v61, 0.0  ;;  %v372_v14 = vmax.f32 %v368_v62, 0.0  ;;  %v373_v15 = vmax.f32 %v369_v63, 0.0  ;;  %v374_v16 = vmax.f32 %v370_v8, 0.0  ;;  %s1832_s4 = sld [smem:[#allocation2 + $0x190]] }
  0x71   :  { %v394_v17 = vmul.f32 %v393_v10, %v1498_v4  ;;  %v395_v18 = vmul.f32 %v393_v10, %v1502_v5  ;;  %v396_v19 = vmul.f32 %v393_v10, %v1504_v6  ;;  %v397_v20 = vmul.f32 %v393_v10, %v1506_v7  ;;  %s1835_s5 = sld [smem:[#allocation2 + $0x91]] }
  0x72   :  { %v376_v21 = vmul.f32 %v375_v52, %v371_v13  ;;  %v377_v22 = vmul.f32 %v375_v52, %v372_v14  ;;  %v378_v23 = vmul.f32 %v375_v52, %v373_v15  ;;  %v379_v24 = vmul.f32 %v375_v52, %v374_v16  ;;  %s1840_s6 = sld [smem:[#allocation2 + $0x111]] }
  0x73   :  { %v398_v25 = vadd.f32 %v394_v17, %v389_v58  ;;  %v399_v26 = vadd.f32 %v395_v18, %v390_v59  ;;  %v400_v27 = vadd.f32 %v396_v19, %v391_v60  ;;  %v401_v28 = vadd.f32 %v397_v20, %v392_v9 }
  0x74   :  { %v380_v29 = vadd.f32 %v376_v21, %v344_v49  ;;  %v381_v30 = vadd.f32 %v377_v22, %v345_v50  ;;  %v382_v31 = vadd.f32 %v378_v23, %v346_v51  ;;  %v383_v37 = vadd.f32 %v379_v24, %v347_v57 }
  0x75   :  { %v403_v33 = vadd.f32 %v402_v11, %v398_v25  ;;  %v404_v34 = vadd.f32 %v402_v11, %v399_v26  ;;  %v405_v35 = vadd.f32 %v402_v11, %v400_v27  ;;  %v406_v36 = vadd.f32 %v402_v11, %v401_v28 }
  0x76   :  { %v425_v38 = vmul.f32 %v424_v12, %v1490_v0  ;;  %v426_v39 = vmul.f32 %v424_v12, %v1492_v1  ;;  %v427_v40 = vmul.f32 %v424_v12, %v1494_v2  ;;  %v428_v45 = vmul.f32 %v424_v12, %v1496_v3 }
  0x77   :  { %v407_v41 = vmax.f32 %v403_v33, 0.0  ;;  %v408_v42 = vmax.f32 %v404_v34, 0.0  ;;  %v409_v43 = vmax.f32 %v405_v35, 0.0  ;;  %v410_v44 = vmax.f32 %v406_v36, 0.0 }
  0x78   :  { %v429_v46 = vstv %s1682_s7  ;;  %v438_v47 = vstv %s1687_s8  ;;  %v460_v48 = vstv %s1690_s9  ;;  %v447_v60 = vstv %s1696_s10  ;;  %s1842_s7 = sld [smem:[#allocation2 + $0x12]] }
  0x79   :  { %v412_v49 = vmul.f32 %v411_v32, %v407_v41  ;;  %v413_v50 = vmul.f32 %v411_v32, %v408_v42  ;;  %v414_v51 = vmul.f32 %v411_v32, %v409_v43  ;;  %v415_v52 = vmul.f32 %v411_v32, %v410_v44  ;;  %s1853_s8 = sld [smem:[#allocation2 + $0x191]] }
  0x7a   :  { %v430_v53 = vmul.f32 %v429_v46, %v1498_v4  ;;  %v431_v54 = vmul.f32 %v429_v46, %v1502_v5  ;;  %v432_v55 = vmul.f32 %v429_v46, %v1504_v6  ;;  %v433_v56 = vmul.f32 %v429_v46, %v1506_v7  ;;  %s1858_s9 = sld [smem:[#allocation2 + $0x92]] }
  0x7b   :  { %v416_v57 = vadd.f32 %v412_v49, %v380_v29  ;;  %v417_v58 = vadd.f32 %v413_v50, %v381_v30  ;;  %v418_v59 = vadd.f32 %v414_v51, %v382_v31  ;;  %v419_v9 = vadd.f32 %v415_v52, %v383_v37  ;;  %s1863_s10 = sld [smem:[#allocation2 + $0x112]] }
  0x7c   :  { %v434_v61 = vadd.f32 %v430_v53, %v425_v38  ;;  %v435_v62 = vadd.f32 %v431_v54, %v426_v39  ;;  %v436_v63 = vadd.f32 %v432_v55, %v427_v40  ;;  %v437_v8 = vadd.f32 %v433_v56, %v428_v45 }
  0x7d   :  { %v461_v10 = vmul.f32 %v460_v48, %v1490_v0  ;;  %v462_v11 = vmul.f32 %v460_v48, %v1492_v1  ;;  %v463_v12 = vmul.f32 %v460_v48, %v1494_v2  ;;  %v464_v17 = vmul.f32 %v460_v48, %v1496_v3 }
  0x7e   :  { %v439_v13 = vadd.f32 %v438_v47, %v434_v61  ;;  %v440_v14 = vadd.f32 %v438_v47, %v435_v62  ;;  %v441_v15 = vadd.f32 %v438_v47, %v436_v63  ;;  %v442_v16 = vadd.f32 %v438_v47, %v437_v8 }
  0x7f   :  { %v465_v18 = vstv %s1699_s11  ;;  %v474_v19 = vstv %s1704_s12  ;;  %v496_v20 = vstv %s1706_s13  ;;  %v483_v40 = vstv %s1717_s14  ;;  %s1866_s11 = sld [smem:[#allocation2 + $0x13]] }
  0x80   :  { %v443_v21 = vmax.f32 %v439_v13, 0.0  ;;  %v444_v22 = vmax.f32 %v440_v14, 0.0  ;;  %v445_v23 = vmax.f32 %v441_v15, 0.0  ;;  %v446_v24 = vmax.f32 %v442_v16, 0.0  ;;  %s1872_s12 = sld [smem:[#allocation2 + $0x192]] }
  0x81   :  { %v466_v25 = vmul.f32 %v465_v18, %v1498_v4  ;;  %v467_v26 = vmul.f32 %v465_v18, %v1502_v5  ;;  %v468_v27 = vmul.f32 %v465_v18, %v1504_v6  ;;  %v469_v28 = vmul.f32 %v465_v18, %v1506_v7  ;;  %s1875_s13 = sld [smem:[#allocation2 + $0x93]] }
  0x82   :  { %v448_v29 = vmul.f32 %v447_v60, %v443_v21  ;;  %v449_v30 = vmul.f32 %v447_v60, %v444_v22  ;;  %v450_v31 = vmul.f32 %v447_v60, %v445_v23  ;;  %v451_v32 = vmul.f32 %v447_v60, %v446_v24  ;;  %s1880_s14 = sld [smem:[#allocation2 + $0x113]] }
  0x83   :  { %v470_v33 = vadd.f32 %v466_v25, %v461_v10  ;;  %v471_v34 = vadd.f32 %v467_v26, %v462_v11  ;;  %v472_v35 = vadd.f32 %v468_v27, %v463_v12  ;;  %v473_v36 = vadd.f32 %v469_v28, %v464_v17 }
  0x84   :  { %v452_v37 = vadd.f32 %v448_v29, %v416_v57  ;;  %v453_v38 = vadd.f32 %v449_v30, %v417_v58  ;;  %v454_v39 = vadd.f32 %v450_v31, %v418_v59  ;;  %v455_v45 = vadd.f32 %v451_v32, %v419_v9 }
  0x85   :  { %v475_v41 = vadd.f32 %v474_v19, %v470_v33  ;;  %v476_v42 = vadd.f32 %v474_v19, %v471_v34  ;;  %v477_v43 = vadd.f32 %v474_v19, %v472_v35  ;;  %v478_v44 = vadd.f32 %v474_v19, %v473_v36 }
  0x86   :  { %v497_v46 = vmul.f32 %v496_v20, %v1490_v0  ;;  %v498_v47 = vmul.f32 %v496_v20, %v1492_v1  ;;  %v499_v48 = vmul.f32 %v496_v20, %v1494_v2  ;;  %v500_v53 = vmul.f32 %v496_v20, %v1496_v3 }
  0x87   :  { %v479_v49 = vmax.f32 %v475_v41, 0.0  ;;  %v480_v50 = vmax.f32 %v476_v42, 0.0  ;;  %v481_v51 = vmax.f32 %v477_v43, 0.0  ;;  %v482_v52 = vmax.f32 %v478_v44, 0.0 }
  0x88   :  { %v501_v54 = vstv %s1722_s15  ;;  %v510_v55 = vstv %s1727_s16  ;;  %v532_v56 = vstv %s1730_s17  ;;  %v519_v12 = vstv %s1736_s18  ;;  %s1882_s15 = sld [smem:[#allocation2 + $0x14]] }
  0x89   :  { %v484_v57 = vmul.f32 %v483_v40, %v479_v49  ;;  %v485_v58 = vmul.f32 %v483_v40, %v480_v50  ;;  %v486_v59 = vmul.f32 %v483_v40, %v481_v51  ;;  %v487_v60 = vmul.f32 %v483_v40, %v482_v52  ;;  %s1893_s16 = sld [smem:[#allocation2 + $0x193]] }
  0x8a   :  { %v502_v61 = vmul.f32 %v501_v54, %v1498_v4  ;;  %v503_v62 = vmul.f32 %v501_v54, %v1502_v5  ;;  %v504_v63 = vmul.f32 %v501_v54, %v1504_v6  ;;  %v505_v8 = vmul.f32 %v501_v54, %v1506_v7  ;;  %s1898_s17 = sld [smem:[#allocation2 + $0x94]] }
  0x8b   :  { %v488_v9 = vadd.f32 %v484_v57, %v452_v37  ;;  %v489_v10 = vadd.f32 %v485_v58, %v453_v38  ;;  %v490_v11 = vadd.f32 %v486_v59, %v454_v39  ;;  %v491_v17 = vadd.f32 %v487_v60, %v455_v45  ;;  %s1903_s18 = sld [smem:[#allocation2 + $0x114]] }
  0x8c   :  { %v506_v13 = vadd.f32 %v502_v61, %v497_v46  ;;  %v507_v14 = vadd.f32 %v503_v62, %v498_v47  ;;  %v508_v15 = vadd.f32 %v504_v63, %v499_v48  ;;  %v509_v16 = vadd.f32 %v505_v8, %v500_v53  ;;  %v1792_v63 = vld [vmem:[#allocation7] sm:$0xff]  ;;  %v1795_v8 = vld [vmem:[#allocation7 + $0x8] sm:$0xff] }
  0x8d   :  { %v533_v18 = vmul.f32 %v532_v56, %v1490_v0  ;;  %v534_v19 = vmul.f32 %v532_v56, %v1492_v1  ;;  %v535_v20 = vmul.f32 %v532_v56, %v1494_v2  ;;  %v536_v25 = vmul.f32 %v532_v56, %v1496_v3 }
  0x8e   :  { %v511_v21 = vadd.f32 %v510_v55, %v506_v13  ;;  %v512_v22 = vadd.f32 %v510_v55, %v507_v14  ;;  %v513_v23 = vadd.f32 %v510_v55, %v508_v15  ;;  %v514_v24 = vadd.f32 %v510_v55, %v509_v16 }
  0x8f   :  { %v537_v26 = vstv %s1739_s19  ;;  %v546_v27 = vstv %s1744_s20  ;;  %v568_v28 = vstv %s1746_s21  ;;  %v555_v47 = vstv %s1757_s22  ;;  %s1906_s19 = sld [smem:[#allocation2 + $0x15]] }
  0x90   :  { %v515_v29 = vmax.f32 %v511_v21, 0.0  ;;  %v516_v30 = vmax.f32 %v512_v22, 0.0  ;;  %v517_v31 = vmax.f32 %v513_v23, 0.0  ;;  %v518_v32 = vmax.f32 %v514_v24, 0.0  ;;  %v1807_v22 = vld [vmem:[#allocation6] sm:$0xff]  ;;  %v1810_v24 = vld [vmem:[#allocation6 + $0x8] sm:$0xff] }
  0x91   :  { %v538_v33 = vmul.f32 %v537_v26, %v1498_v4  ;;  %v539_v34 = vmul.f32 %v537_v26, %v1502_v5  ;;  %v540_v35 = vmul.f32 %v537_v26, %v1504_v6  ;;  %v541_v36 = vmul.f32 %v537_v26, %v1506_v7  ;;  %v1813_v26 = vld [vmem:[#allocation6 + $0x10] sm:$0xff]  ;;  %s1912_s20 = sld [smem:[#allocation2 + $0x194]] }
  0x92   :  { %v520_v37 = vmul.f32 %v519_v12, %v515_v29  ;;  %v521_v38 = vmul.f32 %v519_v12, %v516_v30  ;;  %v522_v39 = vmul.f32 %v519_v12, %v517_v31  ;;  %v523_v40 = vmul.f32 %v519_v12, %v518_v32  ;;  %v1818_v32 = vld [vmem:[#allocation6 + $0x18] sm:$0xff]  ;;  %s1915_s21 = sld [smem:[#allocation2 + $0x95]] }
  0x93   :  { %v542_v41 = vadd.f32 %v538_v33, %v533_v18  ;;  %v543_v42 = vadd.f32 %v539_v34, %v534_v19  ;;  %v544_v43 = vadd.f32 %v540_v35, %v535_v20  ;;  %v545_v44 = vadd.f32 %v541_v36, %v536_v25  ;;  %s1920_s22 = sld [smem:[#allocation2 + $0x115]] }
  0x94   :  { %v524_v45 = vadd.f32 %v520_v37, %v488_v9  ;;  %v525_v46 = vadd.f32 %v521_v38, %v489_v10  ;;  %v526_v4 = vadd.f32 %v522_v39, %v490_v11  ;;  %v527_v49 = vadd.f32 %v523_v40, %v491_v17  ;;  %v1798_v10 = vld [vmem:[#allocation7 + $0x10] sm:$0xff]  ;;  %v1801_v11 = vld [vmem:[#allocation7 + $0x18] sm:$0xff] }
  0x95   :  { %v547_v48 = vadd.f32 %v546_v27, %v542_v41  ;;  %v548_v5 = vadd.f32 %v546_v27, %v543_v42  ;;  %v549_v6 = vadd.f32 %v546_v27, %v544_v43  ;;  %v550_v7 = vadd.f32 %v546_v27, %v545_v44 }
  0x96   :  { %v569_v50 = vmul.f32 %v568_v28, %v1490_v0  ;;  %v570_v51 = vmul.f32 %v568_v28, %v1492_v1  ;;  %v571_v52 = vmul.f32 %v568_v28, %v1494_v2  ;;  %v572_v57 = vmul.f32 %v568_v28, %v1496_v3 }
  0x97   :  { %v551_v53 = vmax.f32 %v547_v48, 0.0  ;;  %v552_v54 = vmax.f32 %v548_v5, 0.0  ;;  %v553_v55 = vmax.f32 %v549_v6, 0.0  ;;  %v554_v56 = vmax.f32 %v550_v7, 0.0 }
  0x98   :  { %v573_v58 = vstv %s1762_s0  ;;  %v582_v59 = vstv %s1767_s23  ;;  %v604_v60 = vstv %s1770_s1  ;;  %v591_v16 = vstv %s1776_s24  ;;  %s1922_s0 = sld [smem:[#allocation2 + $0x16]] }
  0x99   :  { %v556_v61 = vmul.f32 %v555_v47, %v551_v53  ;;  %v557_v0 = vmul.f32 %v555_v47, %v552_v54  ;;  %v558_v62 = vmul.f32 %v555_v47, %v553_v55  ;;  %v559_v1 = vmul.f32 %v555_v47, %v554_v56  ;;  %s1933_s23 = sld [smem:[#allocation2 + $0x195]] }
  0x9a   :  { %v574_v2 = vmul.f32 %v1792_v63, %v573_v58  ;;  %v575_v9 = vmul.f32 %v1795_v8, %v573_v58  ;;  %v576_v3 = vmul.f32 %v1798_v10, %v573_v58  ;;  %v577_v12 = vmul.f32 %v1801_v11, %v573_v58  ;;  %s1938_s1 = sld [smem:[#allocation2 + $0x96]] }
  0x9b   :  { %v560_v13 = vadd.f32 %v556_v61, %v524_v45  ;;  %v561_v14 = vadd.f32 %v557_v0, %v525_v46  ;;  %v562_v15 = vadd.f32 %v558_v62, %v526_v4  ;;  %v563_v21 = vadd.f32 %v559_v1, %v527_v49  ;;  %s1943_s24 = sld [smem:[#allocation2 + $0x116]] }
  0x9c   :  { %v578_v17 = vadd.f32 %v574_v2, %v569_v50  ;;  %v579_v18 = vadd.f32 %v575_v9, %v570_v51  ;;  %v580_v19 = vadd.f32 %v576_v3, %v571_v52  ;;  %v581_v20 = vadd.f32 %v577_v12, %v572_v57 }
  0x9d   :  { %v605_v23 = vmul.f32 %v1807_v22, %v604_v60  ;;  %v606_v25 = vmul.f32 %v1810_v24, %v604_v60  ;;  %v607_v27 = vmul.f32 %v1813_v26, %v604_v60  ;;  %v608_v33 = vmul.f32 %v1818_v32, %v604_v60 }
  0x9e   :  { %v583_v28 = vadd.f32 %v582_v59, %v578_v17  ;;  %v584_v29 = vadd.f32 %v582_v59, %v579_v18  ;;  %v585_v30 = vadd.f32 %v582_v59, %v580_v19  ;;  %v586_v31 = vadd.f32 %v582_v59, %v581_v20 }
  0x9f   :  { %v609_v34 = vstv %s1779_s25  ;;  %v618_v35 = vstv %s1784_s26  ;;  %v640_v36 = vstv %s1786_s27  ;;  %v627_v52 = vstv %s1805_s2  ;;  %s1946_s25 = sld [smem:[#allocation2 + $0x17]] }
  0xa0   :  { %v587_v37 = vmax.f32 %v583_v28, 0.0  ;;  %v588_v38 = vmax.f32 %v584_v29, 0.0  ;;  %v589_v39 = vmax.f32 %v585_v30, 0.0  ;;  %v590_v40 = vmax.f32 %v586_v31, 0.0  ;;  %s1952_s26 = sld [smem:[#allocation2 + $0x196]] }
  0xa1   :  { %v610_v41 = vmul.f32 %v1792_v63, %v609_v34  ;;  %v611_v42 = vmul.f32 %v1795_v8, %v609_v34  ;;  %v612_v43 = vmul.f32 %v1798_v10, %v609_v34  ;;  %v613_v44 = vmul.f32 %v1801_v11, %v609_v34  ;;  %s1955_s27 = sld [smem:[#allocation2 + $0x97]] }
  0xa2   :  { %v592_v45 = vmul.f32 %v591_v16, %v587_v37  ;;  %v593_v46 = vmul.f32 %v591_v16, %v588_v38  ;;  %v594_v4 = vmul.f32 %v591_v16, %v589_v39  ;;  %v595_v47 = vmul.f32 %v591_v16, %v590_v40  ;;  %s1960_s2 = sld [smem:[#allocation2 + $0x117]] }
  0xa3   :  { %v614_v48 = vadd.f32 %v610_v41, %v605_v23  ;;  %v615_v5 = vadd.f32 %v611_v42, %v606_v25  ;;  %v616_v6 = vadd.f32 %v612_v43, %v607_v27  ;;  %v617_v7 = vadd.f32 %v613_v44, %v608_v33 }
  0xa4   :  { %v596_v49 = vadd.f32 %v592_v45, %v560_v13  ;;  %v597_v50 = vadd.f32 %v593_v46, %v561_v14  ;;  %v598_v51 = vadd.f32 %v594_v4, %v562_v15  ;;  %v599_v57 = vadd.f32 %v595_v47, %v563_v21 }
  0xa5   :  { %v619_v53 = vadd.f32 %v618_v35, %v614_v48  ;;  %v620_v54 = vadd.f32 %v618_v35, %v615_v5  ;;  %v621_v55 = vadd.f32 %v618_v35, %v616_v6  ;;  %v622_v56 = vadd.f32 %v618_v35, %v617_v7 }
  0xa6   :  { %v641_v58 = vmul.f32 %v1807_v22, %v640_v36  ;;  %v642_v59 = vmul.f32 %v1810_v24, %v640_v36  ;;  %v643_v60 = vmul.f32 %v1813_v26, %v640_v36  ;;  %v644_v2 = vmul.f32 %v1818_v32, %v640_v36 }
  0xa7   :  { %v623_v61 = vmax.f32 %v619_v53, 0.0  ;;  %v624_v0 = vmax.f32 %v620_v54, 0.0  ;;  %v625_v62 = vmax.f32 %v621_v55, 0.0  ;;  %v626_v1 = vmax.f32 %v622_v56, 0.0 }
  0xa8   :  { %v645_v9 = vstv %s1816_s28  ;;  %v654_v3 = vstv %s1823_s29  ;;  %v676_v12 = vstv %s1826_s30  ;;  %v663_v27 = vstv %s1832_s4  ;;  %s1962_s28 = sld [smem:[#allocation2 + $0x18]] }
  0xa9   :  { %v628_v13 = vmul.f32 %v627_v52, %v623_v61  ;;  %v629_v14 = vmul.f32 %v627_v52, %v624_v0  ;;  %v630_v15 = vmul.f32 %v627_v52, %v625_v62  ;;  %v631_v16 = vmul.f32 %v627_v52, %v626_v1  ;;  %s1973_s29 = sld [smem:[#allocation2 + $0x197]] }
  0xaa   :  { %v646_v17 = vmul.f32 %v1792_v63, %v645_v9  ;;  %v647_v18 = vmul.f32 %v1795_v8, %v645_v9  ;;  %v648_v19 = vmul.f32 %v1798_v10, %v645_v9  ;;  %v649_v20 = vmul.f32 %v1801_v11, %v645_v9  ;;  %s1978_s30 = sld [smem:[#allocation2 + $0x98]] }
  0xab   :  { %v632_v21 = vadd.f32 %v628_v13, %v596_v49  ;;  %v633_v23 = vadd.f32 %v629_v14, %v597_v50  ;;  %v634_v25 = vadd.f32 %v630_v15, %v598_v51  ;;  %v635_v33 = vadd.f32 %v631_v16, %v599_v57  ;;  %s1983_s4 = sld [smem:[#allocation2 + $0x118]] }
  0xac   :  { %v650_v28 = vadd.f32 %v646_v17, %v641_v58  ;;  %v651_v29 = vadd.f32 %v647_v18, %v642_v59  ;;  %v652_v30 = vadd.f32 %v648_v19, %v643_v60  ;;  %v653_v31 = vadd.f32 %v649_v20, %v644_v2 }
  0xad   :  { %v677_v34 = vmul.f32 %v1807_v22, %v676_v12  ;;  %v678_v35 = vmul.f32 %v1810_v24, %v676_v12  ;;  %v679_v36 = vmul.f32 %v1813_v26, %v676_v12  ;;  %v680_v41 = vmul.f32 %v1818_v32, %v676_v12 }
  0xae   :  { %v655_v37 = vadd.f32 %v654_v3, %v650_v28  ;;  %v656_v38 = vadd.f32 %v654_v3, %v651_v29  ;;  %v657_v39 = vadd.f32 %v654_v3, %v652_v30  ;;  %v658_v40 = vadd.f32 %v654_v3, %v653_v31 }
  0xaf   :  { %v681_v42 = vstv %s1835_s5  ;;  %v690_v43 = vstv %s1840_s6  ;;  %v712_v44 = vstv %s1842_s7  ;;  %v699_v60 = vstv %s1853_s8  ;;  %s1986_s5 = sld [smem:[#allocation2 + $0x19]] }
  0xb0   :  { %v659_v45 = vmax.f32 %v655_v37, 0.0  ;;  %v660_v46 = vmax.f32 %v656_v38, 0.0  ;;  %v661_v4 = vmax.f32 %v657_v39, 0.0  ;;  %v662_v47 = vmax.f32 %v658_v40, 0.0  ;;  %s1992_s6 = sld [smem:[#allocation2 + $0x198]] }
  0xb1   :  { %v682_v48 = vmul.f32 %v1792_v63, %v681_v42  ;;  %v683_v5 = vmul.f32 %v1795_v8, %v681_v42  ;;  %v684_v6 = vmul.f32 %v1798_v10, %v681_v42  ;;  %v685_v7 = vmul.f32 %v1801_v11, %v681_v42  ;;  %s1995_s7 = sld [smem:[#allocation2 + $0x99]] }
  0xb2   :  { %v664_v49 = vmul.f32 %v663_v27, %v659_v45  ;;  %v665_v50 = vmul.f32 %v663_v27, %v660_v46  ;;  %v666_v51 = vmul.f32 %v663_v27, %v661_v4  ;;  %v667_v52 = vmul.f32 %v663_v27, %v662_v47  ;;  %s2000_s8 = sld [smem:[#allocation2 + $0x119]] }
  0xb3   :  { %v686_v53 = vadd.f32 %v682_v48, %v677_v34  ;;  %v687_v54 = vadd.f32 %v683_v5, %v678_v35  ;;  %v688_v55 = vadd.f32 %v684_v6, %v679_v36  ;;  %v689_v56 = vadd.f32 %v685_v7, %v680_v41 }
  0xb4   :  { %v668_v57 = vadd.f32 %v664_v49, %v632_v21  ;;  %v669_v58 = vadd.f32 %v665_v50, %v633_v23  ;;  %v670_v59 = vadd.f32 %v666_v51, %v634_v25  ;;  %v671_v2 = vadd.f32 %v667_v52, %v635_v33 }
  0xb5   :  { %v691_v61 = vadd.f32 %v690_v43, %v686_v53  ;;  %v692_v0 = vadd.f32 %v690_v43, %v687_v54  ;;  %v693_v62 = vadd.f32 %v690_v43, %v688_v55  ;;  %v694_v1 = vadd.f32 %v690_v43, %v689_v56 }
  0xb6   :  { %v713_v9 = vmul.f32 %v1807_v22, %v712_v44  ;;  %v714_v3 = vmul.f32 %v1810_v24, %v712_v44  ;;  %v715_v12 = vmul.f32 %v1813_v26, %v712_v44  ;;  %v716_v17 = vmul.f32 %v1818_v32, %v712_v44 }
  0xb7   :  { %v695_v13 = vmax.f32 %v691_v61, 0.0  ;;  %v696_v14 = vmax.f32 %v692_v0, 0.0  ;;  %v697_v15 = vmax.f32 %v693_v62, 0.0  ;;  %v698_v16 = vmax.f32 %v694_v1, 0.0 }
  0xb8   :  { %v717_v18 = vstv %s1858_s9  ;;  %v726_v19 = vstv %s1863_s10  ;;  %v748_v20 = vstv %s1866_s11  ;;  %v735_v36 = vstv %s1872_s12  ;;  %s2002_s9 = sld [smem:[#allocation2 + $0x1a]] }
  0xb9   :  { %v700_v21 = vmul.f32 %v699_v60, %v695_v13  ;;  %v701_v23 = vmul.f32 %v699_v60, %v696_v14  ;;  %v702_v25 = vmul.f32 %v699_v60, %v697_v15  ;;  %v703_v27 = vmul.f32 %v699_v60, %v698_v16  ;;  %s2013_s10 = sld [smem:[#allocation2 + $0x199]] }
  0xba   :  { %v718_v28 = vmul.f32 %v1792_v63, %v717_v18  ;;  %v719_v29 = vmul.f32 %v1795_v8, %v717_v18  ;;  %v720_v30 = vmul.f32 %v1798_v10, %v717_v18  ;;  %v721_v31 = vmul.f32 %v1801_v11, %v717_v18  ;;  %s2018_s11 = sld [smem:[#allocation2 + $0x9a]] }
  0xbb   :  { %v704_v33 = vadd.f32 %v700_v21, %v668_v57  ;;  %v705_v34 = vadd.f32 %v701_v23, %v669_v58  ;;  %v706_v35 = vadd.f32 %v702_v25, %v670_v59  ;;  %v707_v41 = vadd.f32 %v703_v27, %v671_v2  ;;  %s2023_s12 = sld [smem:[#allocation2 + $0x11a]] }
  0xbc   :  { %v722_v37 = vadd.f32 %v718_v28, %v713_v9  ;;  %v723_v38 = vadd.f32 %v719_v29, %v714_v3  ;;  %v724_v39 = vadd.f32 %v720_v30, %v715_v12  ;;  %v725_v40 = vadd.f32 %v721_v31, %v716_v17 }
  0xbd   :  { %v749_v42 = vmul.f32 %v1807_v22, %v748_v20  ;;  %v750_v43 = vmul.f32 %v1810_v24, %v748_v20  ;;  %v751_v44 = vmul.f32 %v1813_v26, %v748_v20  ;;  %v752_v48 = vmul.f32 %v1818_v32, %v748_v20 }
  0xbe   :  { %v727_v45 = vadd.f32 %v726_v19, %v722_v37  ;;  %v728_v46 = vadd.f32 %v726_v19, %v723_v38  ;;  %v729_v4 = vadd.f32 %v726_v19, %v724_v39  ;;  %v730_v47 = vadd.f32 %v726_v19, %v725_v40 }
  0xbf   :  { %v753_v5 = vstv %s1875_s13  ;;  %v762_v6 = vstv %s1880_s14  ;;  %v784_v7 = vstv %s1882_s15  ;;  %v771_v12 = vstv %s1893_s16  ;;  %s2026_s13 = sld [smem:[#allocation2 + $0x1b]] }
  0xc0   :  { %v731_v49 = vmax.f32 %v727_v45, 0.0  ;;  %v732_v50 = vmax.f32 %v728_v46, 0.0  ;;  %v733_v51 = vmax.f32 %v729_v4, 0.0  ;;  %v734_v52 = vmax.f32 %v730_v47, 0.0  ;;  %s2032_s14 = sld [smem:[#allocation2 + $0x19a]] }
  0xc1   :  { %v754_v53 = vmul.f32 %v1792_v63, %v753_v5  ;;  %v755_v54 = vmul.f32 %v1795_v8, %v753_v5  ;;  %v756_v55 = vmul.f32 %v1798_v10, %v753_v5  ;;  %v757_v56 = vmul.f32 %v1801_v11, %v753_v5  ;;  %s2035_s15 = sld [smem:[#allocation2 + $0x9b]] }
  0xc2   :  { %v736_v57 = vmul.f32 %v735_v36, %v731_v49  ;;  %v737_v58 = vmul.f32 %v735_v36, %v732_v50  ;;  %v738_v59 = vmul.f32 %v735_v36, %v733_v51  ;;  %v739_v60 = vmul.f32 %v735_v36, %v734_v52  ;;  %s2040_s16 = sld [smem:[#allocation2 + $0x11b]] }
  0xc3   :  { %v758_v61 = vadd.f32 %v754_v53, %v749_v42  ;;  %v759_v0 = vadd.f32 %v755_v54, %v750_v43  ;;  %v760_v62 = vadd.f32 %v756_v55, %v751_v44  ;;  %v761_v1 = vadd.f32 %v757_v56, %v752_v48 }
  0xc4   :  { %v740_v2 = vadd.f32 %v736_v57, %v704_v33  ;;  %v741_v9 = vadd.f32 %v737_v58, %v705_v34  ;;  %v742_v3 = vadd.f32 %v738_v59, %v706_v35  ;;  %v743_v17 = vadd.f32 %v739_v60, %v707_v41 }
  0xc5   :  { %v763_v13 = vadd.f32 %v762_v6, %v758_v61  ;;  %v764_v14 = vadd.f32 %v762_v6, %v759_v0  ;;  %v765_v15 = vadd.f32 %v762_v6, %v760_v62  ;;  %v766_v16 = vadd.f32 %v762_v6, %v761_v1 }
  0xc6   :  { %v785_v18 = vmul.f32 %v1807_v22, %v784_v7  ;;  %v786_v19 = vmul.f32 %v1810_v24, %v784_v7  ;;  %v787_v20 = vmul.f32 %v1813_v26, %v784_v7  ;;  %v788_v28 = vmul.f32 %v1818_v32, %v784_v7 }
  0xc7   :  { %v767_v21 = vmax.f32 %v763_v13, 0.0  ;;  %v768_v23 = vmax.f32 %v764_v14, 0.0  ;;  %v769_v25 = vmax.f32 %v765_v15, 0.0  ;;  %v770_v27 = vmax.f32 %v766_v16, 0.0 }
  0xc8   :  { %v789_v29 = vstv %s1898_s17  ;;  %v798_v30 = vstv %s1903_s18  ;;  %v820_v31 = vstv %s1906_s19  ;;  %v807_v44 = vstv %s1912_s20  ;;  %s2042_s17 = sld [smem:[#allocation2 + $0x1c]] }
  0xc9   :  { %v772_v33 = vmul.f32 %v771_v12, %v767_v21  ;;  %v773_v34 = vmul.f32 %v771_v12, %v768_v23  ;;  %v774_v35 = vmul.f32 %v771_v12, %v769_v25  ;;  %v775_v36 = vmul.f32 %v771_v12, %v770_v27  ;;  %s2053_s18 = sld [smem:[#allocation2 + $0x19b]] }
  0xca   :  { %v790_v37 = vmul.f32 %v1792_v63, %v789_v29  ;;  %v791_v38 = vmul.f32 %v1795_v8, %v789_v29  ;;  %v792_v39 = vmul.f32 %v1798_v10, %v789_v29  ;;  %v793_v40 = vmul.f32 %v1801_v11, %v789_v29  ;;  %s2058_s19 = sld [smem:[#allocation2 + $0x9c]] }
  0xcb   :  { %v776_v41 = vadd.f32 %v772_v33, %v740_v2  ;;  %v777_v42 = vadd.f32 %v773_v34, %v741_v9  ;;  %v778_v43 = vadd.f32 %v774_v35, %v742_v3  ;;  %v779_v48 = vadd.f32 %v775_v36, %v743_v17  ;;  %s2063_s20 = sld [smem:[#allocation2 + $0x11c]] }
  0xcc   :  { %v794_v45 = vadd.f32 %v790_v37, %v785_v18  ;;  %v795_v46 = vadd.f32 %v791_v38, %v786_v19  ;;  %v796_v4 = vadd.f32 %v792_v39, %v787_v20  ;;  %v797_v47 = vadd.f32 %v793_v40, %v788_v28 }
  0xcd   :  { %v821_v5 = vmul.f32 %v1807_v22, %v820_v31  ;;  %v822_v6 = vmul.f32 %v1810_v24, %v820_v31  ;;  %v823_v7 = vmul.f32 %v1813_v26, %v820_v31  ;;  %v824_v53 = vmul.f32 %v1818_v32, %v820_v31 }
  0xce   :  { %v799_v49 = vadd.f32 %v798_v30, %v794_v45  ;;  %v800_v50 = vadd.f32 %v798_v30, %v795_v46  ;;  %v801_v51 = vadd.f32 %v798_v30, %v796_v4  ;;  %v802_v52 = vadd.f32 %v798_v30, %v797_v47 }
  0xcf   :  { %v825_v54 = vstv %s1915_s21  ;;  %v834_v55 = vstv %s1920_s22  ;;  %v856_v56 = vstv %s1922_s0  ;;  %v843_v20 = vstv %s1933_s23  ;;  %s2066_s21 = sld [smem:[#allocation2 + $0x1d]] }
  0xd0   :  { %v803_v57 = vmax.f32 %v799_v49, 0.0  ;;  %v804_v58 = vmax.f32 %v800_v50, 0.0  ;;  %v805_v59 = vmax.f32 %v801_v51, 0.0  ;;  %v806_v60 = vmax.f32 %v802_v52, 0.0  ;;  %s2072_s22 = sld [smem:[#allocation2 + $0x19c]] }
  0xd1   :  { %v826_v61 = vmul.f32 %v1792_v63, %v825_v54  ;;  %v827_v0 = vmul.f32 %v1795_v8, %v825_v54  ;;  %v828_v62 = vmul.f32 %v1798_v10, %v825_v54  ;;  %v829_v1 = vmul.f32 %v1801_v11, %v825_v54  ;;  %s2075_s0 = sld [smem:[#allocation2 + $0x9d]] }
  0xd2   :  { %v808_v2 = vmul.f32 %v807_v44, %v803_v57  ;;  %v809_v9 = vmul.f32 %v807_v44, %v804_v58  ;;  %v810_v3 = vmul.f32 %v807_v44, %v805_v59  ;;  %v811_v12 = vmul.f32 %v807_v44, %v806_v60  ;;  %s2080_s23 = sld [smem:[#allocation2 + $0x11d]] }
  0xd3   :  { %v830_v13 = vadd.f32 %v826_v61, %v821_v5  ;;  %v831_v14 = vadd.f32 %v827_v0, %v822_v6  ;;  %v832_v15 = vadd.f32 %v828_v62, %v823_v7  ;;  %v833_v16 = vadd.f32 %v829_v1, %v824_v53 }
  0xd4   :  { %v812_v17 = vadd.f32 %v808_v2, %v776_v41  ;;  %v813_v18 = vadd.f32 %v809_v9, %v777_v42  ;;  %v814_v19 = vadd.f32 %v810_v3, %v778_v43  ;;  %v815_v28 = vadd.f32 %v811_v12, %v779_v48 }
  0xd5   :  { %v835_v21 = vadd.f32 %v834_v55, %v830_v13  ;;  %v836_v23 = vadd.f32 %v834_v55, %v831_v14  ;;  %v837_v25 = vadd.f32 %v834_v55, %v832_v15  ;;  %v838_v27 = vadd.f32 %v834_v55, %v833_v16 }
  0xd6   :  { %v857_v29 = vmul.f32 %v1807_v22, %v856_v56  ;;  %v858_v30 = vmul.f32 %v1810_v24, %v856_v56  ;;  %v859_v31 = vmul.f32 %v1813_v26, %v856_v56  ;;  %v860_v37 = vmul.f32 %v1818_v32, %v856_v56 }
  0xd7   :  { %v839_v33 = vmax.f32 %v835_v21, 0.0  ;;  %v840_v34 = vmax.f32 %v836_v23, 0.0  ;;  %v841_v35 = vmax.f32 %v837_v25, 0.0  ;;  %v842_v36 = vmax.f32 %v838_v27, 0.0 }
  0xd8   :  { %v861_v38 = vstv %s1938_s1  ;;  %v870_v39 = vstv %s1943_s24  ;;  %v892_v40 = vstv %s1946_s25  ;;  %v879_v7 = vstv %s1952_s26  ;;  %s2082_s1 = sld [smem:[#allocation2 + $0x1e]] }
  0xd9   :  { %v844_v41 = vmul.f32 %v843_v20, %v839_v33  ;;  %v845_v42 = vmul.f32 %v843_v20, %v840_v34  ;;  %v846_v43 = vmul.f32 %v843_v20, %v841_v35  ;;  %v847_v44 = vmul.f32 %v843_v20, %v842_v36  ;;  %s2093_s24 = sld [smem:[#allocation2 + $0x19d]] }
  0xda   :  { %v862_v45 = vmul.f32 %v1792_v63, %v861_v38  ;;  %v863_v46 = vmul.f32 %v1795_v8, %v861_v38  ;;  %v864_v4 = vmul.f32 %v1798_v10, %v861_v38  ;;  %v865_v47 = vmul.f32 %v1801_v11, %v861_v38  ;;  %s2101_s25 = sld [smem:[#allocation2 + $0x9e]] }
  0xdb   :  { %v848_v48 = vadd.f32 %v844_v41, %v812_v17  ;;  %v849_v5 = vadd.f32 %v845_v42, %v813_v18  ;;  %v850_v6 = vadd.f32 %v846_v43, %v814_v19  ;;  %v851_v53 = vadd.f32 %v847_v44, %v815_v28  ;;  %s2104_s26 = sld [smem:[#allocation2 + $0x1f]] }
  0xdc   :  { %v866_v49 = vadd.f32 %v862_v45, %v857_v29  ;;  %v867_v50 = vadd.f32 %v863_v46, %v858_v30  ;;  %v868_v51 = vadd.f32 %v864_v4, %v859_v31  ;;  %v869_v52 = vadd.f32 %v865_v47, %v860_v37 }
  0xdd   :  { %v893_v54 = vmul.f32 %v1807_v22, %v892_v40  ;;  %v894_v55 = vmul.f32 %v1810_v24, %v892_v40  ;;  %v895_v56 = vmul.f32 %v1813_v26, %v892_v40  ;;  %v896_v61 = vmul.f32 %v1818_v32, %v892_v40 }
  0xde   :  { %v871_v57 = vadd.f32 %v870_v39, %v866_v49  ;;  %v872_v58 = vadd.f32 %v870_v39, %v867_v50  ;;  %v873_v59 = vadd.f32 %v870_v39, %v868_v51  ;;  %v874_v60 = vadd.f32 %v870_v39, %v869_v52 }
  0xdf   :  { %v897_v0 = vstv %s1955_s27  ;;  %v906_v62 = vstv %s1960_s2  ;;  %v928_v1 = vstv %s1962_s28  ;;  %v915_v31 = vstv %s1973_s29  ;;  %s2118_s27 = sld [smem:[#allocation2 + $0x11e]] }
  0xe0   :  { %v875_v2 = vmax.f32 %v871_v57, 0.0  ;;  %v876_v9 = vmax.f32 %v872_v58, 0.0  ;;  %v877_v3 = vmax.f32 %v873_v59, 0.0  ;;  %v878_v12 = vmax.f32 %v874_v60, 0.0  ;;  %s2120_s2 = sld [smem:[#allocation2 + $0x19e]] }
  0xe1   :  { %v898_v13 = vmul.f32 %v1792_v63, %v897_v0  ;;  %v899_v14 = vmul.f32 %v1795_v8, %v897_v0  ;;  %v900_v15 = vmul.f32 %v1798_v10, %v897_v0  ;;  %v901_v16 = vmul.f32 %v1801_v11, %v897_v0  ;;  %s2123_s28 = sld [smem:[#allocation2 + $0x9f]] }
  0xe2   :  { %v880_v17 = vmul.f32 %v879_v7, %v875_v2  ;;  %v881_v18 = vmul.f32 %v879_v7, %v876_v9  ;;  %v882_v19 = vmul.f32 %v879_v7, %v877_v3  ;;  %v883_v20 = vmul.f32 %v879_v7, %v878_v12  ;;  %s2125_s29 = sld [smem:[#allocation2 + $0x11f]] }
  0xe3   :  { %v902_v21 = vadd.f32 %v898_v13, %v893_v54  ;;  %v903_v23 = vadd.f32 %v899_v14, %v894_v55  ;;  %v904_v25 = vadd.f32 %v900_v15, %v895_v56  ;;  %v905_v27 = vadd.f32 %v901_v16, %v896_v61 }
  0xe4   :  { %v884_v28 = vadd.f32 %v880_v17, %v848_v48  ;;  %v885_v29 = vadd.f32 %v881_v18, %v849_v5  ;;  %v886_v30 = vadd.f32 %v882_v19, %v850_v6  ;;  %v887_v37 = vadd.f32 %v883_v20, %v851_v53 }
  0xe5   :  { %v907_v33 = vadd.f32 %v906_v62, %v902_v21  ;;  %v908_v34 = vadd.f32 %v906_v62, %v903_v23  ;;  %v909_v35 = vadd.f32 %v906_v62, %v904_v25  ;;  %v910_v36 = vadd.f32 %v906_v62, %v905_v27 }
  0xe6   :  { %v929_v38 = vmul.f32 %v1807_v22, %v928_v1  ;;  %v930_v39 = vmul.f32 %v1810_v24, %v928_v1  ;;  %v931_v40 = vmul.f32 %v1813_v26, %v928_v1  ;;  %v932_v45 = vmul.f32 %v1818_v32, %v928_v1 }
  0xe7   :  { %v911_v41 = vmax.f32 %v907_v33, 0.0  ;;  %v912_v42 = vmax.f32 %v908_v34, 0.0  ;;  %v913_v43 = vmax.f32 %v909_v35, 0.0  ;;  %v914_v44 = vmax.f32 %v910_v36, 0.0 }
  0xe8   :  { %v933_v46 = vstv %s1978_s30  ;;  %v942_v4 = vstv %s1983_s4  ;;  %v964_v47 = vstv %s1986_s5  ;;  %v951_v56 = vstv %s1992_s6  ;;  %s1360_s30 = sld [smem:[#allocation2 + $0x19f]]  ;;  %s1460_s4 = smov [#allocation9]  }
  0xe9   :  { %v916_v48 = vmul.f32 %v915_v31, %v911_v41  ;;  %v917_v5 = vmul.f32 %v915_v31, %v912_v42  ;;  %v918_v6 = vmul.f32 %v915_v31, %v913_v43  ;;  %v919_v7 = vmul.f32 %v915_v31, %v914_v44  ;;  %s1222_s5 = sshll.u32 %s1460_s4, 4  ;;  %s1223_s5 = int_to_ptr.vmem [resolvable:$true] %s1222_s5 }
  0xea   :  { %v934_v49 = vmul.f32 %v1792_v63, %v933_v46  ;;  %v935_v50 = vmul.f32 %v1795_v8, %v933_v46  ;;  %v936_v51 = vmul.f32 %v1798_v10, %v933_v46  ;;  %v937_v52 = vmul.f32 %v1801_v11, %v933_v46  ;;  %s1429_s6 = scalar_lea.vmem %s1223_s5, 512  ;;  %p1434_p11 = scmp.lt.s32.totalorder %s1223_s5, %s1223_s5 }
  0xeb   :  { %v920_v53 = vadd.f32 %v916_v48, %v884_v28  ;;  %v921_v54 = vadd.f32 %v917_v5, %v885_v29  ;;  %v922_v55 = vadd.f32 %v918_v6, %v886_v30  ;;  %v923_v61 = vadd.f32 %v919_v7, %v887_v37  ;;  %p1430_p10 = scmp.ne.s32.totalorder %s1223_s5, %s1429_s6  ;;  %p1435_p12 = scmp.lt.s32.totalorder %s1429_s6, %s1429_s6 }
  0xec   :  { %v938_v57 = vadd.f32 %v934_v49, %v929_v38  ;;  %v939_v58 = vadd.f32 %v935_v50, %v930_v39  ;;  %v940_v59 = vadd.f32 %v936_v51, %v931_v40  ;;  %v941_v60 = vadd.f32 %v937_v52, %v932_v45 }
  0xed   :  { %v965_v0 = vmul.f32 %v1807_v22, %v964_v47  ;;  %v966_v62 = vmul.f32 %v1810_v24, %v964_v47  ;;  %v967_v1 = vmul.f32 %v1813_v26, %v964_v47  ;;  %v968_v13 = vmul.f32 %v1818_v32, %v964_v47  ;;  %p1436_p13 = por %p1435_p12, %p1434_p11 }
  0xee   :  { %v943_v2 = vadd.f32 %v942_v4, %v938_v57  ;;  %v944_v9 = vadd.f32 %v942_v4, %v939_v58  ;;  %v945_v3 = vadd.f32 %v942_v4, %v940_v59  ;;  %v946_v12 = vadd.f32 %v942_v4, %v941_v60 }
  0xef   :  { %v969_v14 = vstv %s1995_s7  ;;  %v978_v15 = vstv %s2000_s8  ;;  %v1000_v16 = vstv %s2002_s9  ;;  %v987_v40 = vstv %s2013_s10  ;;  %p1437_p0 = pnand %p1436_p13, %p1430_p10 }
  0xf0   :  { %v947_v17 = vmax.f32 %v943_v2, 0.0  ;;  %v948_v18 = vmax.f32 %v944_v9, 0.0  ;;  %v949_v19 = vmax.f32 %v945_v3, 0.0  ;;  %v950_v20 = vmax.f32 %v946_v12, 0.0 }
  0xf1   :  { %v970_v21 = vmul.f32 %v1792_v63, %v969_v14  ;;  %v971_v23 = vmul.f32 %v1795_v8, %v969_v14  ;;  %v972_v25 = vmul.f32 %v1798_v10, %v969_v14  ;;  %v973_v27 = vmul.f32 %v1801_v11, %v969_v14 }
  0xf2   :  { %v952_v28 = vmul.f32 %v951_v56, %v947_v17  ;;  %v953_v29 = vmul.f32 %v951_v56, %v948_v18  ;;  %v954_v30 = vmul.f32 %v951_v56, %v949_v19  ;;  %v955_v31 = vmul.f32 %v951_v56, %v950_v20 }
  0xf3   :  { %v974_v33 = vadd.f32 %v970_v21, %v965_v0  ;;  %v975_v34 = vadd.f32 %v971_v23, %v966_v62  ;;  %v976_v35 = vadd.f32 %v972_v25, %v967_v1  ;;  %v977_v36 = vadd.f32 %v973_v27, %v968_v13 }
  0xf4   :  { %v956_v37 = vadd.f32 %v952_v28, %v920_v53  ;;  %v957_v38 = vadd.f32 %v953_v29, %v921_v54  ;;  %v958_v39 = vadd.f32 %v954_v30, %v922_v55  ;;  %v959_v45 = vadd.f32 %v955_v31, %v923_v61 }
  0xf5   :  { %v979_v41 = vadd.f32 %v978_v15, %v974_v33  ;;  %v980_v42 = vadd.f32 %v978_v15, %v975_v34  ;;  %v981_v43 = vadd.f32 %v978_v15, %v976_v35  ;;  %v982_v44 = vadd.f32 %v978_v15, %v977_v36 }
  0xf6   :  { %v1001_v46 = vmul.f32 %v1807_v22, %v1000_v16  ;;  %v1002_v4 = vmul.f32 %v1810_v24, %v1000_v16  ;;  %v1003_v47 = vmul.f32 %v1813_v26, %v1000_v16  ;;  %v1004_v49 = vmul.f32 %v1818_v32, %v1000_v16 }
  0xf7   :  { %v983_v48 = vmax.f32 %v979_v41, 0.0  ;;  %v984_v5 = vmax.f32 %v980_v42, 0.0  ;;  %v985_v6 = vmax.f32 %v981_v43, 0.0  ;;  %v986_v7 = vmax.f32 %v982_v44, 0.0 }
  0xf8   :  { %v1005_v50 = vstv %s2018_s11  ;;  %v1014_v51 = vstv %s2023_s12  ;;  %v1036_v52 = vstv %s2026_s13  ;;  %v1023_v1 = vstv %s2032_s14 }
  0xf9   :  { %v988_v53 = vmul.f32 %v987_v40, %v983_v48  ;;  %v989_v54 = vmul.f32 %v987_v40, %v984_v5  ;;  %v990_v55 = vmul.f32 %v987_v40, %v985_v6  ;;  %v991_v56 = vmul.f32 %v987_v40, %v986_v7 }
  0xfa   :  { %v1006_v57 = vmul.f32 %v1792_v63, %v1005_v50  ;;  %v1007_v58 = vmul.f32 %v1795_v8, %v1005_v50  ;;  %v1008_v59 = vmul.f32 %v1798_v10, %v1005_v50  ;;  %v1009_v60 = vmul.f32 %v1801_v11, %v1005_v50 }
  0xfb   :  { %v992_v61 = vadd.f32 %v988_v53, %v956_v37  ;;  %v993_v0 = vadd.f32 %v989_v54, %v957_v38  ;;  %v994_v62 = vadd.f32 %v990_v55, %v958_v39  ;;  %v995_v13 = vadd.f32 %v991_v56, %v959_v45 }
  0xfc   :  { %v1010_v2 = vadd.f32 %v1006_v57, %v1001_v46  ;;  %v1011_v9 = vadd.f32 %v1007_v58, %v1002_v4  ;;  %v1012_v3 = vadd.f32 %v1008_v59, %v1003_v47  ;;  %v1013_v12 = vadd.f32 %v1009_v60, %v1004_v49 }
  0xfd   :  { %v1037_v14 = vmul.f32 %v1807_v22, %v1036_v52  ;;  %v1038_v15 = vmul.f32 %v1810_v24, %v1036_v52  ;;  %v1039_v16 = vmul.f32 %v1813_v26, %v1036_v52  ;;  %v1040_v21 = vmul.f32 %v1818_v32, %v1036_v52 }
  0xfe   :  { %v1015_v17 = vadd.f32 %v1014_v51, %v1010_v2  ;;  %v1016_v18 = vadd.f32 %v1014_v51, %v1011_v9  ;;  %v1017_v19 = vadd.f32 %v1014_v51, %v1012_v3  ;;  %v1018_v20 = vadd.f32 %v1014_v51, %v1013_v12 }
  0xff   :  { %v1041_v23 = vstv %s2035_s15  ;;  %v1050_v25 = vstv %s2040_s16  ;;  %v1072_v27 = vstv %s2042_s17  ;;  %v1059_v47 = vstv %s2053_s18 }
 0x100   :  { %v1019_v28 = vmax.f32 %v1015_v17, 0.0  ;;  %v1020_v29 = vmax.f32 %v1016_v18, 0.0  ;;  %v1021_v30 = vmax.f32 %v1017_v19, 0.0  ;;  %v1022_v31 = vmax.f32 %v1018_v20, 0.0 }
 0x101   :  { %v1042_v33 = vmul.f32 %v1792_v63, %v1041_v23  ;;  %v1043_v34 = vmul.f32 %v1795_v8, %v1041_v23  ;;  %v1044_v35 = vmul.f32 %v1798_v10, %v1041_v23  ;;  %v1045_v36 = vmul.f32 %v1801_v11, %v1041_v23 }
 0x102   :  { %v1024_v37 = vmul.f32 %v1023_v1, %v1019_v28  ;;  %v1025_v38 = vmul.f32 %v1023_v1, %v1020_v29  ;;  %v1026_v39 = vmul.f32 %v1023_v1, %v1021_v30  ;;  %v1027_v40 = vmul.f32 %v1023_v1, %v1022_v31 }
 0x103   :  { %v1046_v41 = vadd.f32 %v1042_v33, %v1037_v14  ;;  %v1047_v42 = vadd.f32 %v1043_v34, %v1038_v15  ;;  %v1048_v43 = vadd.f32 %v1044_v35, %v1039_v16  ;;  %v1049_v44 = vadd.f32 %v1045_v36, %v1040_v21 }
 0x104   :  { %v1028_v45 = vadd.f32 %v1024_v37, %v992_v61  ;;  %v1029_v46 = vadd.f32 %v1025_v38, %v993_v0  ;;  %v1030_v4 = vadd.f32 %v1026_v39, %v994_v62  ;;  %v1031_v49 = vadd.f32 %v1027_v40, %v995_v13  ;;  %v2115_v39 = vld [vmem:[#allocation7 + $0x18] sm:$0xff] }
 0x105   :  { %v1051_v48 = vadd.f32 %v1050_v25, %v1046_v41  ;;  %v1052_v5 = vadd.f32 %v1050_v25, %v1047_v42  ;;  %v1053_v6 = vadd.f32 %v1050_v25, %v1048_v43  ;;  %v1054_v7 = vadd.f32 %v1050_v25, %v1049_v44 }
 0x106   :  { %v1073_v50 = vmul.f32 %v1807_v22, %v1072_v27  ;;  %v1074_v51 = vmul.f32 %v1810_v24, %v1072_v27  ;;  %v1075_v52 = vmul.f32 %v1813_v26, %v1072_v27  ;;  %v1076_v57 = vmul.f32 %v1818_v32, %v1072_v27 }
 0x107   :  { %v1055_v53 = vmax.f32 %v1051_v48, 0.0  ;;  %v1056_v54 = vmax.f32 %v1052_v5, 0.0  ;;  %v1057_v55 = vmax.f32 %v1053_v6, 0.0  ;;  %v1058_v56 = vmax.f32 %v1054_v7, 0.0 }
 0x108   :  { %v1077_v58 = vstv %s2058_s19  ;;  %v1086_v59 = vstv %s2063_s20  ;;  %v1108_v60 = vstv %s2066_s21  ;;  %v1095_v16 = vstv %s2072_s22 }
 0x109   :  { %v1060_v61 = vmul.f32 %v1059_v47, %v1055_v53  ;;  %v1061_v0 = vmul.f32 %v1059_v47, %v1056_v54  ;;  %v1062_v62 = vmul.f32 %v1059_v47, %v1057_v55  ;;  %v1063_v1 = vmul.f32 %v1059_v47, %v1058_v56  ;;  %v1377_v54 = vld [vmem:[#allocation6] sm:$0xff]  ;;  %v1378_v56 = vld [vmem:[#allocation6 + $0x8] sm:$0xff] }
 0x10a   :  { %v1078_v2 = vmul.f32 %v1792_v63, %v1077_v58  ;;  %v1079_v9 = vmul.f32 %v1795_v8, %v1077_v58  ;;  %v1080_v3 = vmul.f32 %v1798_v10, %v1077_v58  ;;  %v1081_v12 = vmul.f32 %v1801_v11, %v1077_v58 }
 0x10b   :  { %v1064_v13 = vadd.f32 %v1060_v61, %v1028_v45  ;;  %v1065_v14 = vadd.f32 %v1061_v0, %v1029_v46  ;;  %v1066_v15 = vadd.f32 %v1062_v62, %v1030_v4  ;;  %v1067_v63 = vadd.f32 %v1063_v1, %v1031_v49  ;;  %v1379_v0 = vld [vmem:[#allocation6 + $0x10] sm:$0xff]  ;;  %v1380_v1 = vld [vmem:[#allocation6 + $0x18] sm:$0xff] }
 0x10c   :  { %v1082_v17 = vadd.f32 %v1078_v2, %v1073_v50  ;;  %v1083_v18 = vadd.f32 %v1079_v9, %v1074_v51  ;;  %v1084_v19 = vadd.f32 %v1080_v3, %v1075_v52  ;;  %v1085_v20 = vadd.f32 %v1081_v12, %v1076_v57 }
 0x10d   :  { %v1109_v8 = vmul.f32 %v1807_v22, %v1108_v60  ;;  %v1110_v10 = vmul.f32 %v1810_v24, %v1108_v60  ;;  %v1111_v11 = vmul.f32 %v1813_v26, %v1108_v60  ;;  %v1112_v28 = vmul.f32 %v1818_v32, %v1108_v60  ;;  %v2106_v22 = vld [vmem:[#allocation7] sm:$0xff]  ;;  %v2109_v26 = vld [vmem:[#allocation7 + $0x8] sm:$0xff]  ;;  %v2112_v32 = vld [vmem:[#allocation7 + $0x10] sm:$0xff] }
 0x10e   :  { %v1087_v21 = vadd.f32 %v1086_v59, %v1082_v17  ;;  %v1088_v23 = vadd.f32 %v1086_v59, %v1083_v18  ;;  %v1089_v25 = vadd.f32 %v1086_v59, %v1084_v19  ;;  %v1090_v27 = vadd.f32 %v1086_v59, %v1085_v20 }
 0x10f   :  { %v1113_v29 = vstv %s2075_s0  ;;  %v1122_v30 = vstv %s2080_s23  ;;  %v1144_v31 = vstv %s2082_s1  ;;  %v1131_v6 = vstv %s2093_s24 }
 0x110   :  { %v1091_v33 = vmax.f32 %v1087_v21, 0.0  ;;  %v1092_v34 = vmax.f32 %v1088_v23, 0.0  ;;  %v1093_v35 = vmax.f32 %v1089_v25, 0.0  ;;  %v1094_v36 = vmax.f32 %v1090_v27, 0.0 }
 0x111   :  { %v1114_v24 = vmul.f32 %v2106_v22, %v1113_v29  ;;  %v1115_v37 = vmul.f32 %v2109_v26, %v1113_v29  ;;  %v1116_v38 = vmul.f32 %v2112_v32, %v1113_v29  ;;  %v1117_v40 = vmul.f32 %v2115_v39, %v1113_v29 }
 0x112   :  { %v1096_v41 = vmul.f32 %v1095_v16, %v1091_v33  ;;  %v1097_v42 = vmul.f32 %v1095_v16, %v1092_v34  ;;  %v1098_v43 = vmul.f32 %v1095_v16, %v1093_v35  ;;  %v1099_v44 = vmul.f32 %v1095_v16, %v1094_v36 }
 0x113   :  { %v1118_v45 = vadd.f32 %v1114_v24, %v1109_v8  ;;  %v1119_v46 = vadd.f32 %v1115_v37, %v1110_v10  ;;  %v1120_v4 = vadd.f32 %v1116_v38, %v1111_v11  ;;  %v1121_v47 = vadd.f32 %v1117_v40, %v1112_v28 }
 0x114   :  { %v1100_v48 = vadd.f32 %v1096_v41, %v1064_v13  ;;  %v1101_v5 = vadd.f32 %v1097_v42, %v1065_v14  ;;  %v1102_v52 = vadd.f32 %v1098_v43, %v1066_v15  ;;  %v1103_v53 = vadd.f32 %v1099_v44, %v1067_v63 }
 0x115   :  { %v1123_v7 = vadd.f32 %v1122_v30, %v1118_v45  ;;  %v1124_v49 = vadd.f32 %v1122_v30, %v1119_v46  ;;  %v1125_v50 = vadd.f32 %v1122_v30, %v1120_v4  ;;  %v1126_v51 = vadd.f32 %v1122_v30, %v1121_v47 }
 0x116   :  { %v1145_v55 = vmul.f32 %v1377_v54, %v1144_v31  ;;  %v1146_v57 = vmul.f32 %v1378_v56, %v1144_v31  ;;  %v1147_v62 = vmul.f32 %v1379_v0, %v1144_v31  ;;  %v1148_v2 = vmul.f32 %v1380_v1, %v1144_v31 }
 0x117   :  { %v1127_v58 = vmax.f32 %v1123_v7, 0.0  ;;  %v1128_v59 = vmax.f32 %v1124_v49, 0.0  ;;  %v1129_v60 = vmax.f32 %v1125_v50, 0.0  ;;  %v1130_v61 = vmax.f32 %v1126_v51, 0.0 }
 0x118   :  { %v1149_v9 = vstv %s2101_s25  ;;  %v1180_v3 = vstv %s2104_s26  ;;  %v1158_v8 = vstv %s2118_s27  ;;  %v1167_v10 = vstv %s2120_s2 }
 0x119   :  { %v1132_v12 = vmul.f32 %v1131_v6, %v1127_v58  ;;  %v1133_v13 = vmul.f32 %v1131_v6, %v1128_v59  ;;  %v1134_v14 = vmul.f32 %v1131_v6, %v1129_v60  ;;  %v1135_v15 = vmul.f32 %v1131_v6, %v1130_v61 }
 0x11a   :  { %v1150_v16 = vmul.f32 %v2106_v22, %v1149_v9  ;;  %v1151_v17 = vmul.f32 %v2109_v26, %v1149_v9  ;;  %v1152_v18 = vmul.f32 %v2112_v32, %v1149_v9  ;;  %v1153_v19 = vmul.f32 %v2115_v39, %v1149_v9 }
 0x11b   :  { %v1136_v20 = vadd.f32 %v1132_v12, %v1100_v48  ;;  %v1137_v63 = vadd.f32 %v1133_v13, %v1101_v5  ;;  %v1138_v27 = vadd.f32 %v1134_v14, %v1102_v52  ;;  %v1139_v28 = vadd.f32 %v1135_v15, %v1103_v53 }
 0x11c   :  { %v1154_v11 = vadd.f32 %v1150_v16, %v1145_v55  ;;  %v1155_v21 = vadd.f32 %v1151_v17, %v1146_v57  ;;  %v1156_v23 = vadd.f32 %v1152_v18, %v1147_v62  ;;  %v1157_v25 = vadd.f32 %v1153_v19, %v1148_v2 }
 0x11d   :  { %v1181_v29 = vmul.f32 %v1377_v54, %v1180_v3  ;;  %v1182_v30 = vmul.f32 %v1378_v56, %v1180_v3  ;;  %v1183_v36 = vmul.f32 %v1379_v0, %v1180_v3  ;;  %v1184_v24 = vmul.f32 %v1380_v1, %v1180_v3 }
 0x11e   :  { %v1159_v31 = vadd.f32 %v1158_v8, %v1154_v11  ;;  %v1160_v33 = vadd.f32 %v1158_v8, %v1155_v21  ;;  %v1161_v34 = vadd.f32 %v1158_v8, %v1156_v23  ;;  %v1162_v35 = vadd.f32 %v1158_v8, %v1157_v25 }
 0x11f   :  { %v1185_v37 = vstv %s2123_s28  ;;  %v1194_v38 = vstv %s2125_s29  ;;  %v1203_v52 = vstv %s1360_s30 }
 0x120   :  { %v1163_v40 = vmax.f32 %v1159_v31, 0.0  ;;  %v1164_v41 = vmax.f32 %v1160_v33, 0.0  ;;  %v1165_v42 = vmax.f32 %v1161_v34, 0.0  ;;  %v1166_v43 = vmax.f32 %v1162_v35, 0.0 }
 0x121   :  { %v1186_v44 = vmul.f32 %v2106_v22, %v1185_v37  ;;  %v1187_v45 = vmul.f32 %v2109_v26, %v1185_v37  ;;  %v1188_v46 = vmul.f32 %v2112_v32, %v1185_v37  ;;  %v1189_v4 = vmul.f32 %v2115_v39, %v1185_v37 }
 0x122   :  { %v1168_v47 = vmul.f32 %v1167_v10, %v1163_v40  ;;  %v1169_v48 = vmul.f32 %v1167_v10, %v1164_v41  ;;  %v1170_v5 = vmul.f32 %v1167_v10, %v1165_v42  ;;  %v1171_v6 = vmul.f32 %v1167_v10, %v1166_v43 }
 0x123   :  { %v1190_v7 = vadd.f32 %v1186_v44, %v1181_v29  ;;  %v1191_v49 = vadd.f32 %v1187_v45, %v1182_v30  ;;  %v1192_v50 = vadd.f32 %v1188_v46, %v1183_v36  ;;  %v1193_v51 = vadd.f32 %v1189_v4, %v1184_v24 }
 0x124   :  { %v1172_v22 = vadd.f32 %v1168_v47, %v1136_v20  ;;  %v1173_v57 = vadd.f32 %v1169_v48, %v1137_v63  ;;  %v1174_v26 = vadd.f32 %v1170_v5, %v1138_v27  ;;  %v1175_v58 = vadd.f32 %v1171_v6, %v1139_v28 }
 0x125   :  { %v1195_v53 = vadd.f32 %v1194_v38, %v1190_v7  ;;  %v1196_v54 = vadd.f32 %v1194_v38, %v1191_v49  ;;  %v1197_v55 = vadd.f32 %v1194_v38, %v1192_v50  ;;  %v1198_v56 = vadd.f32 %v1194_v38, %v1193_v51 }
 0x127   :  { %v1199_v32 = vmax.f32 %v1195_v53, 0.0  ;;  %v1200_v59 = vmax.f32 %v1196_v54, 0.0  ;;  %v1201_v39 = vmax.f32 %v1197_v55, 0.0  ;;  %v1202_v60 = vmax.f32 %v1198_v56, 0.0 }
 0x129   :  { %v1204_v61 = vmul.f32 %v1203_v52, %v1199_v32  ;;  %v1205_v0 = vmul.f32 %v1203_v52, %v1200_v59  ;;  %v1206_v62 = vmul.f32 %v1203_v52, %v1201_v39  ;;  %v1207_v1 = vmul.f32 %v1203_v52, %v1202_v60 }
 0x12b   :  { %v1208_v2 = vadd.f32 %v1204_v61, %v1172_v22  ;;  %v1209_v9 = vadd.f32 %v1205_v0, %v1173_v57  ;;  %v1210_v3 = vadd.f32 %v1206_v62, %v1174_v26  ;;  %v1211_v12 = vadd.f32 %v1207_v1, %v1175_v58 }
 0x12d   :  { %1212 = vst [vmem:[#allocation9] sm:$0xff] %v1208_v2  ;;  %1213 = vst [vmem:[#allocation9 + $0x8] sm:$0xff] %v1209_v9 }
 0x12e   :  { %1214 = vst [vmem:[#allocation9 + $0x10] sm:$0xff] %v1210_v3  ;;  %1215 = vst [vmem:[#allocation9 + $0x18] sm:$0xff] %v1211_v12 }
 0x12f   :  { %1440 = shalt.err (!%p1437_p0)
}
 0x130   :  { %1225 = dma.vmem_to_hbm [thread:$0]  %s1223_s5, 512, %s2147_s3, [#allocation4]  }
 0x131   :  { %1455 = dma.done.wait [#allocation4], 512  }
 0x132   :  { %1456 = vsyncadd [#allocation4], 4294966784 }
 0x133   :  { %1229 = vsyncpa [#allocation3], 1 }
 0x134   :  { %1230 = vsyncpa [#allocation8], 1 }
 0x135   :  { %1231 = vsyncpa [#allocation4], 1 }
 0x136   :  { %1232 = vsyncpa [#allocation5], 1 }

</bundles_post_ra>
